<compile_context>
chip_gen: v7x
topology: tpu7x:2x2x1
jax: 0.10.0
libtpu: 0.0.40
codegen_flags: <defaults>
</compile_context>

<pallas_src>
import numpy as np
import jax
import jax.numpy as jnp
from jax import lax
from jax.experimental import pallas as pl


# ----------------------------------------------------------------------------
# Pallas kernel: bidirectional LSTM with per-sequence length masking.
# Gate order follows PyTorch nn.LSTM: i, f, g, o.
#   x_ref   : (T, B, E)  f32, time-major embeddings
#   lens_ref: (B, 1)     i32, sequence lengths (0 for padded batch rows)
#   w*_ref  : (E|H, 4H)  f32, input/recurrent weights (already transposed)
#   b*_ref  : (1, 4H)    f32, b_ih + b_hh
#   out_ref : (T, B, 2H) f32, [fwd | bwd] hidden states, zero where t >= len
# ----------------------------------------------------------------------------
def _bilstm_kernel(x_ref, lens_ref,
                   wif_ref, whf_ref, bf_ref,
                   wib_ref, whb_ref, bb_ref,
                   out_ref):
    T, B, E = x_ref.shape
    H4 = whf_ref.shape[1]
    H = H4 // 4

    # ---- hoisted invariants: loaded once, live across the whole recurrence --
    whf = whf_ref[...]                       # (H, 4H)
    whb = whb_ref[...]                       # (H, 4H)
    lens = lens_ref[...]                     # (B, 1) int32

    # ---- input projections for ALL timesteps in one matmul per direction ----
    x_all = x_ref[...].reshape(T * B, E)
    xg_f = (jnp.dot(x_all, wif_ref[...], preferred_element_type=jnp.float32)
            + bf_ref[...]).reshape(T, B, H4)
    xg_b = (jnp.dot(x_all, wib_ref[...], preferred_element_type=jnp.float32)
            + bb_ref[...]).reshape(T, B, H4)

    # ---- per-timestep validity mask precomputed once: (T, B, 1) bool -------
    t_iota = lax.broadcasted_iota(jnp.int32, (T, B, 1), 0)
    valid_all = t_iota < lens.reshape(1, B, 1)

    def cell(gates, c):
        # Nonlinearities on the full (B, 4H) vreg, then lane-slice the gates.
        sig = jax.nn.sigmoid(gates)
        tnh = jnp.tanh(gates)
        i = sig[:, 0 * H:1 * H]
        f = sig[:, 1 * H:2 * H]
        g = tnh[:, 2 * H:3 * H]
        o = sig[:, 3 * H:4 * H]
        c_new = f * c + i * g
        h_new = o * jnp.tanh(c_new)
        return h_new, c_new

    zeros = jnp.zeros((B, H), jnp.float32)
    hf, cf = zeros, zeros          # forward  state (loop carries, in vregs)
    hb, cb = zeros, zeros          # backward state

    # Fully unrolled merged time loop: forward step on t = i, backward step on
    # t = T-1-i.  Packed-sequence semantics: state updates only where t < len,
    # so the reverse chain effectively starts at t = len[b]-1 with zero state.
    for i in range(T):
        tf = i
        tb = T - 1 - i

        # ------------------- forward direction -------------------
        gates_f = xg_f[tf] + jnp.dot(hf, whf,
                                     preferred_element_type=jnp.float32)
        hf_new, cf_new = cell(gates_f, cf)
        vf = valid_all[tf]                                   # (B, 1)
        hf = jnp.where(vf, hf_new, hf)
        cf = jnp.where(vf, cf_new, cf)
        out_ref[tf, :, 0:H] = jnp.where(vf, hf, 0.0)

        # ------------------- backward direction ------------------
        gates_b = xg_b[tb] + jnp.dot(hb, whb,
                                     preferred_element_type=jnp.float32)
        hb_new, cb_new = cell(gates_b, cb)
        vb = valid_all[tb]
        hb = jnp.where(vb, hb_new, hb)
        cb = jnp.where(vb, cb_new, cb)
        out_ref[tb, :, H:2 * H] = jnp.where(vb, hb, 0.0)


def bilstm_pallas(x_tbe, lens_b1, params):
    """x_tbe: (T, B, E) f32, lens_b1: (B, 1) i32 -> (T, B, 2H) f32."""
    T, B, _ = x_tbe.shape
    H = params["whf"].shape[0]
    return pl.pallas_call(
        _bilstm_kernel,
        out_shape=jax.ShapeDtypeStruct((T, B, 2 * H), jnp.float32),
    )(x_tbe, lens_b1,
      params["wif"], params["whf"], params["bf"],
      params["wib"], params["whb"], params["bb"])


# ----------------------------------------------------------------------------
# Pallas kernel: attention pooling (code_encode / desc_encode path).
#   rnn_ref : (B, T, 2H) f32   biLSTM output
#   lens_ref: (B, 1)     i32
#   w_ref   : (2H, R)    f32   linear weight (transposed), b_ref: (1, R)
#   a_ref   : (1, R)     f32   attention parameter
#   out_ref : (B, R)     f32   attention-pooled representation
# ----------------------------------------------------------------------------
def _attn_pool_kernel(rnn_ref, lens_ref, w_ref, b_ref, a_ref, out_ref):
    B, T, H2 = rnn_ref.shape
    R = w_ref.shape[1]
    proj = (jnp.dot(rnn_ref[...].reshape(B * T, H2), w_ref[...],
                    preferred_element_type=jnp.float32)
            + b_ref[...]).reshape(B, T, R)                 # linear(rnn_output)
    scores = jnp.sum(proj * a_ref[...].reshape(1, 1, R), axis=-1)     # (B, T)
    t_iota = lax.broadcasted_iota(jnp.int32, (B, T), 1)
    valid = t_iota < lens_ref[...]                                    # (B, T)
    scores = jnp.where(valid, scores, -1e10)
    m = jnp.max(scores, axis=-1, keepdims=True)
    e = jnp.exp(scores - m)
    attn = e / jnp.sum(e, axis=-1, keepdims=True)
    out_ref[...] = jnp.sum(attn[:, :, None] * proj, axis=1)           # (B, R)


def attn_pool_pallas(rnn_out, input_lens, lin_w, lin_b, attn_param):
    B, T, _ = rnn_out.shape
    R = lin_w.shape[1]
    lens = jnp.asarray(input_lens, jnp.int32).reshape(-1, 1)
    return pl.pallas_call(
        _attn_pool_kernel,
        out_shape=jax.ShapeDtypeStruct((B, R), jnp.float32),
    )(rnn_out, lens, lin_w, lin_b.reshape(1, -1), attn_param.reshape(1, -1))


# ----------------------------------------------------------------------------
# SeqEncoder forward (eval mode): embedding lookup (glue) + Pallas biLSTM.
# ----------------------------------------------------------------------------
def _round_up(n, m):
    return ((n + m - 1) // m) * m


def seq_encoder_forward(tokens, input_lens, emb_table, lstm_params):
    B, T = tokens.shape
    emb = emb_table[tokens]                          # (B, T, E) gather glue
    # F.dropout(p=0.1, training=False) -> identity.
    x_tbe = jnp.transpose(emb, (1, 0, 2))            # (T, B, E) time-major
    lens = jnp.asarray(input_lens, jnp.int32).reshape(-1, 1)
    # Pad batch to a multiple of 8 sublanes; padded rows get len 0 so their
    # outputs are masked to zero and sliced away afterwards.
    Bp = _round_up(B, 8)
    if Bp != B:
        x_tbe = jnp.pad(x_tbe, ((0, 0), (0, Bp - B), (0, 0)))
        lens = jnp.pad(lens, ((0, Bp - B), (0, 0)))
    out_tm = bilstm_pallas(x_tbe, lens, lstm_params)     # (T, Bp, 2H)
    out = jnp.transpose(out_tm, (1, 0, 2))[:B]           # (B, T, 2H) batch_first
    # pad_packed_sequence pads only to max(input_lens).
    max_len = int(np.max(np.asarray(input_lens)))
    return out[:, :max_len]


def desc_encode(desc_tokens, desc_lens, emb_table, lstm_params,
                lin_w, lin_b, attn_param):
    """desc_linear + masked attention pooling on top of the SeqEncoder."""
    rnn_out = seq_encoder_forward(desc_tokens, desc_lens, emb_table, lstm_params)
    return attn_pool_pallas(rnn_out, desc_lens, lin_w, lin_b, attn_param)


# ----------------------------------------------------------------------------
# Numpy references (same math) for correctness checks.
# ----------------------------------------------------------------------------
def _ref_bilstm(x_bte, lens, p, H):
    def sig(v):
        return 1.0 / (1.0 + np.exp(-v))

    B, T, _ = x_bte.shape
    out = np.zeros((B, T, 2 * H), np.float32)
    wif, whf, bf = np.array(p["wif"]), np.array(p["whf"]), np.array(p["bf"])[0]
    wib, whb, bb = np.array(p["wib"]), np.array(p["whb"]), np.array(p["bb"])[0]
    for b in range(B):
        h = np.zeros(H, np.float32); c = np.zeros(H, np.float32)
        for t in range(int(lens[b])):
            g = x_bte[b, t] @ wif + h @ whf + bf
            i, f, gg, o = sig(g[:H]), sig(g[H:2*H]), np.tanh(g[2*H:3*H]), sig(g[3*H:])
            c = f * c + i * gg; h = o * np.tanh(c)
            out[b, t, :H] = h
        h = np.zeros(H, np.float32); c = np.zeros(H, np.float32)
        for t in range(int(lens[b]) - 1, -1, -1):
            g = x_bte[b, t] @ wib + h @ whb + bb
            i, f, gg, o = sig(g[:H]), sig(g[H:2*H]), np.tanh(g[2*H:3*H]), sig(g[3*H:])
            c = f * c + i * gg; h = o * np.tanh(c)
            out[b, t, H:] = h
    return out


def _ref_attn_pool(rnn_out, lens, w, b, a):
    B, T, _ = rnn_out.shape
    proj = rnn_out @ w + b                                 # (B, T, R)
    scores = (proj * a).sum(-1)                            # (B, T)
    mask = np.arange(T)[None, :] < np.asarray(lens)[:, None]
    scores = np.where(mask, scores, -1e10)
    scores = scores - scores.max(-1, keepdims=True)
    e = np.exp(scores)
    attn = e / e.sum(-1, keepdims=True)
    return (attn[:, :, None] * proj).sum(1)


if __name__ == "__main__":
    # Small shapes implied by the module.
    vocab_size, emb_size, hidden, repr_size = 50, 32, 32, 32
    B, T = 4, 8

    key = jax.random.PRNGKey(0)
    k_emb, k_tok, k_lw, k_ap, *k_w = jax.random.split(key, 13)

    # Deterministic "pretrained" embedding table; padding_idx=0 row is zero.
    emb_table = jax.random.normal(k_emb, (vocab_size, emb_size), jnp.float32)
    emb_table = emb_table.at[0].set(0.0)

    # LSTM params, uniform(-0.1, 0.1) as in init_weights(). PyTorch stores
    # weight_ih (4H, E) / weight_hh (4H, H); we pass transposed copies so the
    # kernel computes x @ W_ih^T + h @ W_hh^T + (b_ih + b_hh).
    def u(k, shape):
        return jax.random.uniform(k, shape, jnp.float32, -0.1, 0.1)

    w_ih_f = u(k_w[0], (4 * hidden, emb_size))
    w_hh_f = u(k_w[1], (4 * hidden, hidden))
    b_ih_f = u(k_w[2], (4 * hidden,))
    b_hh_f = u(k_w[3], (4 * hidden,))
    w_ih_b = u(k_w[4], (4 * hidden, emb_size))
    w_hh_b = u(k_w[5], (4 * hidden, hidden))
    b_ih_b = u(k_w[6], (4 * hidden,))
    b_hh_b = u(k_w[7], (4 * hidden,))

    lstm_params = {
        "wif": w_ih_f.T, "whf": w_hh_f.T, "bf": (b_ih_f + b_hh_f).reshape(1, -1),
        "wib": w_ih_b.T, "whb": w_hh_b.T, "bb": (b_ih_b + b_hh_b).reshape(1, -1),
    }

    # desc_linear (nn.Linear(2H, repr_size), bias init 0) + attention param.
    desc_lin_w = u(k_lw, (repr_size, 2 * hidden)).T        # stored as (2H, R)
    desc_lin_b = jnp.zeros((repr_size,), jnp.float32)
    desc_attn_param = jax.random.normal(k_ap, (repr_size,), jnp.float32)

    # Deterministic token ids and variable lengths (pad positions use id 0).
    input_lens = np.array([8, 5, 8, 3], np.int32)
    tokens = np.array(jax.random.randint(k_tok, (B, T), 1, vocab_size, jnp.int32))
    for b in range(B):
        tokens[b, input_lens[b]:] = 0
    tokens = jnp.asarray(tokens)

    # SeqEncoder + attention pooling (the desc_encode path of the module).
    rnn_out = seq_encoder_forward(tokens, input_lens, emb_table, lstm_params)
    desc_repr = attn_pool_pallas(rnn_out, input_lens, desc_lin_w,
                                 desc_lin_b, desc_attn_param)
    rnn_out, desc_repr = jax.block_until_ready((rnn_out, desc_repr))

    # Correctness checks against numpy references.
    x_bte = np.array(emb_table)[np.array(tokens)]
    ref_rnn = _ref_bilstm(x_bte, input_lens, lstm_params, hidden)
    np.testing.assert_allclose(np.array(rnn_out), ref_rnn[:, :rnn_out.shape[1]],
                               atol=1e-4, rtol=1e-4)
    ref_repr = _ref_attn_pool(ref_rnn[:, :rnn_out.shape[1]], input_lens,
                              np.array(desc_lin_w), np.array(desc_lin_b),
                              np.array(desc_attn_param))
    np.testing.assert_allclose(np.array(desc_repr), ref_repr,
                               atol=1e-4, rtol=1e-4)

    print("KERNEL_OK")
</pallas_src>

<mosaic_0001>
module attributes {stable_mosaic.version = 11 : i64} {
  func.func @_bilstm_kernel(%arg0: memref<8x8x32xf32, #tpu.memory_space<vmem>>, %arg1: memref<8x1xi32, #tpu.memory_space<vmem>>, %arg2: memref<32x128xf32, #tpu.memory_space<vmem>>, %arg3: memref<32x128xf32, #tpu.memory_space<vmem>>, %arg4: memref<1x128xf32, #tpu.memory_space<vmem>>, %arg5: memref<32x128xf32, #tpu.memory_space<vmem>>, %arg6: memref<32x128xf32, #tpu.memory_space<vmem>>, %arg7: memref<1x128xf32, #tpu.memory_space<vmem>>, %arg8: memref<8x8x64xf32, #tpu.memory_space<vmem>>) attributes {dimension_semantics = [], scalar_prefetch = 0 : i64, scratch_operands = 0 : i64, tpu.core_type = #tpu.core_type<tc>} {
    %c0 = arith.constant 0 : index
    %c0_0 = arith.constant 0 : index
    %0 = vector.load %arg3[%c0, %c0_0] : memref<32x128xf32, #tpu.memory_space<vmem>>, vector<32x128xf32>
    %c0_1 = arith.constant 0 : index
    %c0_2 = arith.constant 0 : index
    %1 = vector.load %arg6[%c0_1, %c0_2] : memref<32x128xf32, #tpu.memory_space<vmem>>, vector<32x128xf32>
    %c0_3 = arith.constant 0 : index
    %c0_4 = arith.constant 0 : index
    %2 = vector.load %arg1[%c0_3, %c0_4] : memref<8x1xi32, #tpu.memory_space<vmem>>, vector<8x1xi32>
    %c0_5 = arith.constant 0 : index
    %c0_6 = arith.constant 0 : index
    %c0_7 = arith.constant 0 : index
    %3 = vector.load %arg0[%c0_5, %c0_6, %c0_7] : memref<8x8x32xf32, #tpu.memory_space<vmem>>, vector<8x8x32xf32>
    %4 = vector.shape_cast %3 : vector<8x8x32xf32> to vector<64x32xf32>
    %c0_8 = arith.constant 0 : index
    %c0_9 = arith.constant 0 : index
    %5 = vector.load %arg2[%c0_8, %c0_9] : memref<32x128xf32, #tpu.memory_space<vmem>>, vector<32x128xf32>
    %cst = arith.constant dense<0.000000e+00> : vector<64x128xf32>
    %6 = tpu.matmul %4, %5, %cst {dimension_numbers = #tpu.dot_dimension_numbers<[1], [0], [0], [1], [0, 0, 1, 1], [], []>} : vector<64x32xf32>, vector<32x128xf32>, vector<64x128xf32> -> vector<64x128xf32>
    %c0_10 = arith.constant 0 : index
    %c0_11 = arith.constant 0 : index
    %7 = vector.load %arg4[%c0_10, %c0_11] : memref<1x128xf32, #tpu.memory_space<vmem>>, vector<1x128xf32>
    %8 = vector.broadcast %7 : vector<1x128xf32> to vector<64x128xf32>
    %9 = arith.addf %6, %8 : vector<64x128xf32>
    %10 = vector.shape_cast %9 : vector<64x128xf32> to vector<8x8x128xf32>
    %c0_12 = arith.constant 0 : index
    %c0_13 = arith.constant 0 : index
    %11 = vector.load %arg5[%c0_12, %c0_13] : memref<32x128xf32, #tpu.memory_space<vmem>>, vector<32x128xf32>
    %cst_14 = arith.constant dense<0.000000e+00> : vector<64x128xf32>
    %12 = tpu.matmul %4, %11, %cst_14 {dimension_numbers = #tpu.dot_dimension_numbers<[1], [0], [0], [1], [0, 0, 1, 1], [], []>} : vector<64x32xf32>, vector<32x128xf32>, vector<64x128xf32> -> vector<64x128xf32>
    %c0_15 = arith.constant 0 : index
    %c0_16 = arith.constant 0 : index
    %13 = vector.load %arg7[%c0_15, %c0_16] : memref<1x128xf32, #tpu.memory_space<vmem>>, vector<1x128xf32>
    %14 = vector.broadcast %13 : vector<1x128xf32> to vector<64x128xf32>
    %15 = arith.addf %12, %14 : vector<64x128xf32>
    %16 = vector.shape_cast %15 : vector<64x128xf32> to vector<8x8x128xf32>
    %17 = tpu.iota {dimensions = array<i32: 0>} : vector<8x8x1xi32>
    %18 = vector.shape_cast %2 : vector<8x1xi32> to vector<1x8x1xi32>
    %19 = vector.broadcast %18 : vector<1x8x1xi32> to vector<8x8x1xi32>
    %20 = arith.cmpi slt, %17, %19 : vector<8x8x1xi32>
    %cst_17 = arith.constant 0.000000e+00 : f32
    %21 = vector.broadcast %cst_17 : f32 to vector<8x32xf32>
    %22 = vector.extract_strided_slice %10 {offsets = [0, 0, 0], sizes = [1, 8, 128], strides = [1, 1, 1]} : vector<8x8x128xf32> to vector<1x8x128xf32>
    %23 = vector.shape_cast %22 : vector<1x8x128xf32> to vector<8x128xf32>
    %cst_18 = arith.constant dense<0.000000e+00> : vector<8x128xf32>
    %24 = tpu.matmul %21, %0, %cst_18 {dimension_numbers = #tpu.dot_dimension_numbers<[1], [0], [0], [1], [0, 0, 1, 1], [], []>} : vector<8x32xf32>, vector<32x128xf32>, vector<8x128xf32> -> vector<8x128xf32>
    %25 = arith.addf %23, %24 : vector<8x128xf32>
    %26 = arith.negf %25 : vector<8x128xf32>
    %27 = math.exp %26 : vector<8x128xf32>
    %cst_19 = arith.constant 1.000000e+00 : f32
    %28 = vector.broadcast %cst_19 : f32 to vector<8x128xf32>
    %29 = arith.addf %28, %27 : vector<8x128xf32>
    %30 = arith.divf %28, %29 : vector<8x128xf32>
    %31 = math.tanh %25 : vector<8x128xf32>
    %32 = vector.extract_strided_slice %30 {offsets = [0, 0], sizes = [8, 32], strides = [1, 1]} : vector<8x128xf32> to vector<8x32xf32>
    %33 = vector.extract_strided_slice %30 {offsets = [0, 32], sizes = [8, 32], strides = [1, 1]} : vector<8x128xf32> to vector<8x32xf32>
    %34 = vector.extract_strided_slice %31 {offsets = [0, 64], sizes = [8, 32], strides = [1, 1]} : vector<8x128xf32> to vector<8x32xf32>
    %35 = vector.extract_strided_slice %30 {offsets = [0, 96], sizes = [8, 32], strides = [1, 1]} : vector<8x128xf32> to vector<8x32xf32>
    %36 = arith.mulf %33, %21 : vector<8x32xf32>
    %37 = arith.mulf %32, %34 : vector<8x32xf32>
    %38 = arith.addf %36, %37 : vector<8x32xf32>
    %39 = math.tanh %38 : vector<8x32xf32>
    %40 = arith.mulf %35, %39 : vector<8x32xf32>
    %41 = vector.extract_strided_slice %20 {offsets = [0, 0, 0], sizes = [1, 8, 1], strides = [1, 1, 1]} : vector<8x8x1xi1> to vector<1x8x1xi1>
    %42 = vector.shape_cast %41 : vector<1x8x1xi1> to vector<8x1xi1>
    %43 = vector.shape_cast %42 : vector<8x1xi1> to vector<8x1xi1>
    %44 = vector.broadcast %43 : vector<8x1xi1> to vector<8x32xi1>
    %45 = arith.select %44, %40, %21 : vector<8x32xi1>, vector<8x32xf32>
    %46 = vector.shape_cast %42 : vector<8x1xi1> to vector<8x1xi1>
    %47 = vector.broadcast %46 : vector<8x1xi1> to vector<8x32xi1>
    %48 = arith.select %47, %38, %21 : vector<8x32xi1>, vector<8x32xf32>
    %cst_20 = arith.constant 0.000000e+00 : f32
    %49 = vector.shape_cast %42 : vector<8x1xi1> to vector<8x1xi1>
    %50 = vector.broadcast %49 : vector<8x1xi1> to vector<8x32xi1>
    %51 = vector.broadcast %cst_20 : f32 to vector<8x32xf32>
    %52 = arith.select %50, %45, %51 : vector<8x32xi1>, vector<8x32xf32>
    %c0_21 = arith.constant 0 : index
    %c0_22 = arith.constant 0 : index
    %c0_23 = arith.constant 0 : index
    %53 = vector.load %arg8[%c0_21, %c0_22, %c0_23] : memref<8x8x64xf32, #tpu.memory_space<vmem>>, vector<1x8x32xf32>
    %54 = vector.shape_cast %53 : vector<1x8x32xf32> to vector<8x32xf32>
    %55 = vector.shape_cast %52 : vector<8x32xf32> to vector<1x8x32xf32>
    tpu.vector_store %arg8[%c0_21, %c0_22, %c0_23], %55 {strides = array<i32>} : memref<8x8x64xf32, #tpu.memory_space<vmem>>, vector<1x8x32xf32>,
    %56 = vector.extract_strided_slice %16 {offsets = [7, 0, 0], sizes = [1, 8, 128], strides = [1, 1, 1]} : vector<8x8x128xf32> to vector<1x8x128xf32>
    %57 = vector.shape_cast %56 : vector<1x8x128xf32> to vector<8x128xf32>
    %cst_24 = arith.constant dense<0.000000e+00> : vector<8x128xf32>
    %58 = tpu.matmul %21, %1, %cst_24 {dimension_numbers = #tpu.dot_dimension_numbers<[1], [0], [0], [1], [0, 0, 1, 1], [], []>} : vector<8x32xf32>, vector<32x128xf32>, vector<8x128xf32> -> vector<8x128xf32>
    %59 = arith.addf %57, %58 : vector<8x128xf32>
    %60 = arith.negf %59 : vector<8x128xf32>
    %61 = math.exp %60 : vector<8x128xf32>
    %cst_25 = arith.constant 1.000000e+00 : f32
    %62 = vector.broadcast %cst_25 : f32 to vector<8x128xf32>
    %63 = arith.addf %62, %61 : vector<8x128xf32>
    %64 = arith.divf %62, %63 : vector<8x128xf32>
    %65 = math.tanh %59 : vector<8x128xf32>
    %66 = vector.extract_strided_slice %64 {offsets = [0, 0], sizes = [8, 32], strides = [1, 1]} : vector<8x128xf32> to vector<8x32xf32>
    %67 = vector.extract_strided_slice %64 {offsets = [0, 32], sizes = [8, 32], strides = [1, 1]} : vector<8x128xf32> to vector<8x32xf32>
    %68 = vector.extract_strided_slice %65 {offsets = [0, 64], sizes = [8, 32], strides = [1, 1]} : vector<8x128xf32> to vector<8x32xf32>
    %69 = vector.extract_strided_slice %64 {offsets = [0, 96], sizes = [8, 32], strides = [1, 1]} : vector<8x128xf32> to vector<8x32xf32>
    %70 = arith.mulf %67, %21 : vector<8x32xf32>
    %71 = arith.mulf %66, %68 : vector<8x32xf32>
    %72 = arith.addf %70, %71 : vector<8x32xf32>
    %73 = math.tanh %72 : vector<8x32xf32>
    %74 = arith.mulf %69, %73 : vector<8x32xf32>
    %75 = vector.extract_strided_slice %20 {offsets = [7, 0, 0], sizes = [1, 8, 1], strides = [1, 1, 1]} : vector<8x8x1xi1> to vector<1x8x1xi1>
    %76 = vector.shape_cast %75 : vector<1x8x1xi1> to vector<8x1xi1>
    %77 = vector.shape_cast %76 : vector<8x1xi1> to vector<8x1xi1>
    %78 = vector.broadcast %77 : vector<8x1xi1> to vector<8x32xi1>
    %79 = arith.select %78, %74, %21 : vector<8x32xi1>, vector<8x32xf32>
    %80 = vector.shape_cast %76 : vector<8x1xi1> to vector<8x1xi1>
    %81 = vector.broadcast %80 : vector<8x1xi1> to vector<8x32xi1>
    %82 = arith.select %81, %72, %21 : vector<8x32xi1>, vector<8x32xf32>
    %cst_26 = arith.constant 0.000000e+00 : f32
    %83 = vector.shape_cast %76 : vector<8x1xi1> to vector<8x1xi1>
    %84 = vector.broadcast %83 : vector<8x1xi1> to vector<8x32xi1>
    %85 = vector.broadcast %cst_26 : f32 to vector<8x32xf32>
    %86 = arith.select %84, %79, %85 : vector<8x32xi1>, vector<8x32xf32>
    %c7 = arith.constant 7 : index
    %c0_27 = arith.constant 0 : index
    %c32 = arith.constant 32 : index
    %87 = vector.load %arg8[%c7, %c0_27, %c32] : memref<8x8x64xf32, #tpu.memory_space<vmem>>, vector<1x8x32xf32>
    %88 = vector.shape_cast %87 : vector<1x8x32xf32> to vector<8x32xf32>
    %89 = vector.shape_cast %86 : vector<8x32xf32> to vector<1x8x32xf32>
    tpu.vector_store %arg8[%c7, %c0_27, %c32], %89 {strides = array<i32>} : memref<8x8x64xf32, #tpu.memory_space<vmem>>, vector<1x8x32xf32>,
    %90 = vector.extract_strided_slice %10 {offsets = [1, 0, 0], sizes = [1, 8, 128], strides = [1, 1, 1]} : vector<8x8x128xf32> to vector<1x8x128xf32>
    %91 = vector.shape_cast %90 : vector<1x8x128xf32> to vector<8x128xf32>
    %cst_28 = arith.constant dense<0.000000e+00> : vector<8x128xf32>
    %92 = tpu.matmul %45, %0, %cst_28 {dimension_numbers = #tpu.dot_dimension_numbers<[1], [0], [0], [1], [0, 0, 1, 1], [], []>} : vector<8x32xf32>, vector<32x128xf32>, vector<8x128xf32> -> vector<8x128xf32>
    %93 = arith.addf %91, %92 : vector<8x128xf32>
    %94 = arith.negf %93 : vector<8x128xf32>
    %95 = math.exp %94 : vector<8x128xf32>
    %cst_29 = arith.constant 1.000000e+00 : f32
    %96 = vector.broadcast %cst_29 : f32 to vector<8x128xf32>
    %97 = arith.addf %96, %95 : vector<8x128xf32>
    %98 = arith.divf %96, %97 : vector<8x128xf32>
    %99 = math.tanh %93 : vector<8x128xf32>
    %100 = vector.extract_strided_slice %98 {offsets = [0, 0], sizes = [8, 32], strides = [1, 1]} : vector<8x128xf32> to vector<8x32xf32>
    %101 = vector.extract_strided_slice %98 {offsets = [0, 32], sizes = [8, 32], strides = [1, 1]} : vector<8x128xf32> to vector<8x32xf32>
    %102 = vector.extract_strided_slice %99 {offsets = [0, 64], sizes = [8, 32], strides = [1, 1]} : vector<8x128xf32> to vector<8x32xf32>
    %103 = vector.extract_strided_slice %98 {offsets = [0, 96], sizes = [8, 32], strides = [1, 1]} : vector<8x128xf32> to vector<8x32xf32>
    %104 = arith.mulf %101, %48 : vector<8x32xf32>
    %105 = arith.mulf %100, %102 : vector<8x32xf32>
    %106 = arith.addf %104, %105 : vector<8x32xf32>
    %107 = math.tanh %106 : vector<8x32xf32>
    %108 = arith.mulf %103, %107 : vector<8x32xf32>
    %109 = vector.extract_strided_slice %20 {offsets = [1, 0, 0], sizes = [1, 8, 1], strides = [1, 1, 1]} : vector<8x8x1xi1> to vector<1x8x1xi1>
    %110 = vector.shape_cast %109 : vector<1x8x1xi1> to vector<8x1xi1>
    %111 = vector.shape_cast %110 : vector<8x1xi1> to vector<8x1xi1>
    %112 = vector.broadcast %111 : vector<8x1xi1> to vector<8x32xi1>
    %113 = arith.select %112, %108, %45 : vector<8x32xi1>, vector<8x32xf32>
    %114 = vector.shape_cast %110 : vector<8x1xi1> to vector<8x1xi1>
    %115 = vector.broadcast %114 : vector<8x1xi1> to vector<8x32xi1>
    %116 = arith.select %115, %106, %48 : vector<8x32xi1>, vector<8x32xf32>
    %cst_30 = arith.constant 0.000000e+00 : f32
    %117 = vector.shape_cast %110 : vector<8x1xi1> to vector<8x1xi1>
    %118 = vector.broadcast %117 : vector<8x1xi1> to vector<8x32xi1>
    %119 = vector.broadcast %cst_30 : f32 to vector<8x32xf32>
    %120 = arith.select %118, %113, %119 : vector<8x32xi1>, vector<8x32xf32>
    %c1 = arith.constant 1 : index
    %c0_31 = arith.constant 0 : index
    %c0_32 = arith.constant 0 : index
    %121 = vector.load %arg8[%c1, %c0_31, %c0_32] : memref<8x8x64xf32, #tpu.memory_space<vmem>>, vector<1x8x32xf32>
    %122 = vector.shape_cast %121 : vector<1x8x32xf32> to vector<8x32xf32>
    %123 = vector.shape_cast %120 : vector<8x32xf32> to vector<1x8x32xf32>
    tpu.vector_store %arg8[%c1, %c0_31, %c0_32], %123 {strides = array<i32>} : memref<8x8x64xf32, #tpu.memory_space<vmem>>, vector<1x8x32xf32>,
    %124 = vector.extract_strided_slice %16 {offsets = [6, 0, 0], sizes = [1, 8, 128], strides = [1, 1, 1]} : vector<8x8x128xf32> to vector<1x8x128xf32>
    %125 = vector.shape_cast %124 : vector<1x8x128xf32> to vector<8x128xf32>
    %cst_33 = arith.constant dense<0.000000e+00> : vector<8x128xf32>
    %126 = tpu.matmul %79, %1, %cst_33 {dimension_numbers = #tpu.dot_dimension_numbers<[1], [0], [0], [1], [0, 0, 1, 1], [], []>} : vector<8x32xf32>, vector<32x128xf32>, vector<8x128xf32> -> vector<8x128xf32>
    %127 = arith.addf %125, %126 : vector<8x128xf32>
    %128 = arith.negf %127 : vector<8x128xf32>
    %129 = math.exp %128 : vector<8x128xf32>
    %cst_34 = arith.constant 1.000000e+00 : f32
    %130 = vector.broadcast %cst_34 : f32 to vector<8x128xf32>
    %131 = arith.addf %130, %129 : vector<8x128xf32>
    %132 = arith.divf %130, %131 : vector<8x128xf32>
    %133 = math.tanh %127 : vector<8x128xf32>
    %134 = vector.extract_strided_slice %132 {offsets = [0, 0], sizes = [8, 32], strides = [1, 1]} : vector<8x128xf32> to vector<8x32xf32>
    %135 = vector.extract_strided_slice %132 {offsets = [0, 32], sizes = [8, 32], strides = [1, 1]} : vector<8x128xf32> to vector<8x32xf32>
    %136 = vector.extract_strided_slice %133 {offsets = [0, 64], sizes = [8, 32], strides = [1, 1]} : vector<8x128xf32> to vector<8x32xf32>
    %137 = vector.extract_strided_slice %132 {offsets = [0, 96], sizes = [8, 32], strides = [1, 1]} : vector<8x128xf32> to vector<8x32xf32>
    %138 = arith.mulf %135, %82 : vector<8x32xf32>
    %139 = arith.mulf %134, %136 : vector<8x32xf32>
    %140 = arith.addf %138, %139 : vector<8x32xf32>
    %141 = math.tanh %140 : vector<8x32xf32>
    %142 = arith.mulf %137, %141 : vector<8x32xf32>
    %143 = vector.extract_strided_slice %20 {offsets = [6, 0, 0], sizes = [1, 8, 1], strides = [1, 1, 1]} : vector<8x8x1xi1> to vector<1x8x1xi1>
    %144 = vector.shape_cast %143 : vector<1x8x1xi1> to vector<8x1xi1>
    %145 = vector.shape_cast %144 : vector<8x1xi1> to vector<8x1xi1>
    %146 = vector.broadcast %145 : vector<8x1xi1> to vector<8x32xi1>
    %147 = arith.select %146, %142, %79 : vector<8x32xi1>, vector<8x32xf32>
    %148 = vector.shape_cast %144 : vector<8x1xi1> to vector<8x1xi1>
    %149 = vector.broadcast %148 : vector<8x1xi1> to vector<8x32xi1>
    %150 = arith.select %149, %140, %82 : vector<8x32xi1>, vector<8x32xf32>
    %cst_35 = arith.constant 0.000000e+00 : f32
    %151 = vector.shape_cast %144 : vector<8x1xi1> to vector<8x1xi1>
    %152 = vector.broadcast %151 : vector<8x1xi1> to vector<8x32xi1>
    %153 = vector.broadcast %cst_35 : f32 to vector<8x32xf32>
    %154 = arith.select %152, %147, %153 : vector<8x32xi1>, vector<8x32xf32>
    %c6 = arith.constant 6 : index
    %c0_36 = arith.constant 0 : index
    %c32_37 = arith.constant 32 : index
    %155 = vector.load %arg8[%c6, %c0_36, %c32_37] : memref<8x8x64xf32, #tpu.memory_space<vmem>>, vector<1x8x32xf32>
    %156 = vector.shape_cast %155 : vector<1x8x32xf32> to vector<8x32xf32>
    %157 = vector.shape_cast %154 : vector<8x32xf32> to vector<1x8x32xf32>
    tpu.vector_store %arg8[%c6, %c0_36, %c32_37], %157 {strides = array<i32>} : memref<8x8x64xf32, #tpu.memory_space<vmem>>, vector<1x8x32xf32>,
    %158 = vector.extract_strided_slice %10 {offsets = [2, 0, 0], sizes = [1, 8, 128], strides = [1, 1, 1]} : vector<8x8x128xf32> to vector<1x8x128xf32>
    %159 = vector.shape_cast %158 : vector<1x8x128xf32> to vector<8x128xf32>
    %cst_38 = arith.constant dense<0.000000e+00> : vector<8x128xf32>
    %160 = tpu.matmul %113, %0, %cst_38 {dimension_numbers = #tpu.dot_dimension_numbers<[1], [0], [0], [1], [0, 0, 1, 1], [], []>} : vector<8x32xf32>, vector<32x128xf32>, vector<8x128xf32> -> vector<8x128xf32>
    %161 = arith.addf %159, %160 : vector<8x128xf32>
    %162 = arith.negf %161 : vector<8x128xf32>
    %163 = math.exp %162 : vector<8x128xf32>
    %cst_39 = arith.constant 1.000000e+00 : f32
    %164 = vector.broadcast %cst_39 : f32 to vector<8x128xf32>
    %165 = arith.addf %164, %163 : vector<8x128xf32>
    %166 = arith.divf %164, %165 : vector<8x128xf32>
    %167 = math.tanh %161 : vector<8x128xf32>
    %168 = vector.extract_strided_slice %166 {offsets = [0, 0], sizes = [8, 32], strides = [1, 1]} : vector<8x128xf32> to vector<8x32xf32>
    %169 = vector.extract_strided_slice %166 {offsets = [0, 32], sizes = [8, 32], strides = [1, 1]} : vector<8x128xf32> to vector<8x32xf32>
    %170 = vector.extract_strided_slice %167 {offsets = [0, 64], sizes = [8, 32], strides = [1, 1]} : vector<8x128xf32> to vector<8x32xf32>
    %171 = vector.extract_strided_slice %166 {offsets = [0, 96], sizes = [8, 32], strides = [1, 1]} : vector<8x128xf32> to vector<8x32xf32>
    %172 = arith.mulf %169, %116 : vector<8x32xf32>
    %173 = arith.mulf %168, %170 : vector<8x32xf32>
    %174 = arith.addf %172, %173 : vector<8x32xf32>
    %175 = math.tanh %174 : vector<8x32xf32>
    %176 = arith.mulf %171, %175 : vector<8x32xf32>
    %177 = vector.extract_strided_slice %20 {offsets = [2, 0, 0], sizes = [1, 8, 1], strides = [1, 1, 1]} : vector<8x8x1xi1> to vector<1x8x1xi1>
    %178 = vector.shape_cast %177 : vector<1x8x1xi1> to vector<8x1xi1>
    %179 = vector.shape_cast %178 : vector<8x1xi1> to vector<8x1xi1>
    %180 = vector.broadcast %179 : vector<8x1xi1> to vector<8x32xi1>
    %181 = arith.select %180, %176, %113 : vector<8x32xi1>, vector<8x32xf32>
    %182 = vector.shape_cast %178 : vector<8x1xi1> to vector<8x1xi1>
    %183 = vector.broadcast %182 : vector<8x1xi1> to vector<8x32xi1>
    %184 = arith.select %183, %174, %116 : vector<8x32xi1>, vector<8x32xf32>
    %cst_40 = arith.constant 0.000000e+00 : f32
    %185 = vector.shape_cast %178 : vector<8x1xi1> to vector<8x1xi1>
    %186 = vector.broadcast %185 : vector<8x1xi1> to vector<8x32xi1>
    %187 = vector.broadcast %cst_40 : f32 to vector<8x32xf32>
    %188 = arith.select %186, %181, %187 : vector<8x32xi1>, vector<8x32xf32>
    %c2 = arith.constant 2 : index
    %c0_41 = arith.constant 0 : index
    %c0_42 = arith.constant 0 : index
    %189 = vector.load %arg8[%c2, %c0_41, %c0_42] : memref<8x8x64xf32, #tpu.memory_space<vmem>>, vector<1x8x32xf32>
    %190 = vector.shape_cast %189 : vector<1x8x32xf32> to vector<8x32xf32>
    %191 = vector.shape_cast %188 : vector<8x32xf32> to vector<1x8x32xf32>
    tpu.vector_store %arg8[%c2, %c0_41, %c0_42], %191 {strides = array<i32>} : memref<8x8x64xf32, #tpu.memory_space<vmem>>, vector<1x8x32xf32>,
    %192 = vector.extract_strided_slice %16 {offsets = [5, 0, 0], sizes = [1, 8, 128], strides = [1, 1, 1]} : vector<8x8x128xf32> to vector<1x8x128xf32>
    %193 = vector.shape_cast %192 : vector<1x8x128xf32> to vector<8x128xf32>
    %cst_43 = arith.constant dense<0.000000e+00> : vector<8x128xf32>
    %194 = tpu.matmul %147, %1, %cst_43 {dimension_numbers = #tpu.dot_dimension_numbers<[1], [0], [0], [1], [0, 0, 1, 1], [], []>} : vector<8x32xf32>, vector<32x128xf32>, vector<8x128xf32> -> vector<8x128xf32>
    %195 = arith.addf %193, %194 : vector<8x128xf32>
    %196 = arith.negf %195 : vector<8x128xf32>
    %197 = math.exp %196 : vector<8x128xf32>
    %cst_44 = arith.constant 1.000000e+00 : f32
    %198 = vector.broadcast %cst_44 : f32 to vector<8x128xf32>
    %199 = arith.addf %198, %197 : vector<8x128xf32>
    %200 = arith.divf %198, %199 : vector<8x128xf32>
    %201 = math.tanh %195 : vector<8x128xf32>
    %202 = vector.extract_strided_slice %200 {offsets = [0, 0], sizes = [8, 32], strides = [1, 1]} : vector<8x128xf32> to vector<8x32xf32>
    %203 = vector.extract_strided_slice %200 {offsets = [0, 32], sizes = [8, 32], strides = [1, 1]} : vector<8x128xf32> to vector<8x32xf32>
    %204 = vector.extract_strided_slice %201 {offsets = [0, 64], sizes = [8, 32], strides = [1, 1]} : vector<8x128xf32> to vector<8x32xf32>
    %205 = vector.extract_strided_slice %200 {offsets = [0, 96], sizes = [8, 32], strides = [1, 1]} : vector<8x128xf32> to vector<8x32xf32>
    %206 = arith.mulf %203, %150 : vector<8x32xf32>
    %207 = arith.mulf %202, %204 : vector<8x32xf32>
    %208 = arith.addf %206, %207 : vector<8x32xf32>
    %209 = math.tanh %208 : vector<8x32xf32>
    %210 = arith.mulf %205, %209 : vector<8x32xf32>
    %211 = vector.extract_strided_slice %20 {offsets = [5, 0, 0], sizes = [1, 8, 1], strides = [1, 1, 1]} : vector<8x8x1xi1> to vector<1x8x1xi1>
    %212 = vector.shape_cast %211 : vector<1x8x1xi1> to vector<8x1xi1>
    %213 = vector.shape_cast %212 : vector<8x1xi1> to vector<8x1xi1>
    %214 = vector.broadcast %213 : vector<8x1xi1> to vector<8x32xi1>
    %215 = arith.select %214, %210, %147 : vector<8x32xi1>, vector<8x32xf32>
    %216 = vector.shape_cast %212 : vector<8x1xi1> to vector<8x1xi1>
    %217 = vector.broadcast %216 : vector<8x1xi1> to vector<8x32xi1>
    %218 = arith.select %217, %208, %150 : vector<8x32xi1>, vector<8x32xf32>
    %cst_45 = arith.constant 0.000000e+00 : f32
    %219 = vector.shape_cast %212 : vector<8x1xi1> to vector<8x1xi1>
    %220 = vector.broadcast %219 : vector<8x1xi1> to vector<8x32xi1>
    %221 = vector.broadcast %cst_45 : f32 to vector<8x32xf32>
    %222 = arith.select %220, %215, %221 : vector<8x32xi1>, vector<8x32xf32>
    %c5 = arith.constant 5 : index
    %c0_46 = arith.constant 0 : index
    %c32_47 = arith.constant 32 : index
    %223 = vector.load %arg8[%c5, %c0_46, %c32_47] : memref<8x8x64xf32, #tpu.memory_space<vmem>>, vector<1x8x32xf32>
    %224 = vector.shape_cast %223 : vector<1x8x32xf32> to vector<8x32xf32>
    %225 = vector.shape_cast %222 : vector<8x32xf32> to vector<1x8x32xf32>
    tpu.vector_store %arg8[%c5, %c0_46, %c32_47], %225 {strides = array<i32>} : memref<8x8x64xf32, #tpu.memory_space<vmem>>, vector<1x8x32xf32>,
    %226 = vector.extract_strided_slice %10 {offsets = [3, 0, 0], sizes = [1, 8, 128], strides = [1, 1, 1]} : vector<8x8x128xf32> to vector<1x8x128xf32>
    %227 = vector.shape_cast %226 : vector<1x8x128xf32> to vector<8x128xf32>
    %cst_48 = arith.constant dense<0.000000e+00> : vector<8x128xf32>
    %228 = tpu.matmul %181, %0, %cst_48 {dimension_numbers = #tpu.dot_dimension_numbers<[1], [0], [0], [1], [0, 0, 1, 1], [], []>} : vector<8x32xf32>, vector<32x128xf32>, vector<8x128xf32> -> vector<8x128xf32>
    %229 = arith.addf %227, %228 : vector<8x128xf32>
    %230 = arith.negf %229 : vector<8x128xf32>
    %231 = math.exp %230 : vector<8x128xf32>
    %cst_49 = arith.constant 1.000000e+00 : f32
    %232 = vector.broadcast %cst_49 : f32 to vector<8x128xf32>
    %233 = arith.addf %232, %231 : vector<8x128xf32>
    %234 = arith.divf %232, %233 : vector<8x128xf32>
    %235 = math.tanh %229 : vector<8x128xf32>
    %236 = vector.extract_strided_slice %234 {offsets = [0, 0], sizes = [8, 32], strides = [1, 1]} : vector<8x128xf32> to vector<8x32xf32>
    %237 = vector.extract_strided_slice %234 {offsets = [0, 32], sizes = [8, 32], strides = [1, 1]} : vector<8x128xf32> to vector<8x32xf32>
    %238 = vector.extract_strided_slice %235 {offsets = [0, 64], sizes = [8, 32], strides = [1, 1]} : vector<8x128xf32> to vector<8x32xf32>
    %239 = vector.extract_strided_slice %234 {offsets = [0, 96], sizes = [8, 32], strides = [1, 1]} : vector<8x128xf32> to vector<8x32xf32>
    %240 = arith.mulf %237, %184 : vector<8x32xf32>
    %241 = arith.mulf %236, %238 : vector<8x32xf32>
    %242 = arith.addf %240, %241 : vector<8x32xf32>
    %243 = math.tanh %242 : vector<8x32xf32>
    %244 = arith.mulf %239, %243 : vector<8x32xf32>
    %245 = vector.extract_strided_slice %20 {offsets = [3, 0, 0], sizes = [1, 8, 1], strides = [1, 1, 1]} : vector<8x8x1xi1> to vector<1x8x1xi1>
    %246 = vector.shape_cast %245 : vector<1x8x1xi1> to vector<8x1xi1>
    %247 = vector.shape_cast %246 : vector<8x1xi1> to vector<8x1xi1>
    %248 = vector.broadcast %247 : vector<8x1xi1> to vector<8x32xi1>
    %249 = arith.select %248, %244, %181 : vector<8x32xi1>, vector<8x32xf32>
    %250 = vector.shape_cast %246 : vector<8x1xi1> to vector<8x1xi1>
    %251 = vector.broadcast %250 : vector<8x1xi1> to vector<8x32xi1>
    %252 = arith.select %251, %242, %184 : vector<8x32xi1>, vector<8x32xf32>
    %cst_50 = arith.constant 0.000000e+00 : f32
    %253 = vector.shape_cast %246 : vector<8x1xi1> to vector<8x1xi1>
    %254 = vector.broadcast %253 : vector<8x1xi1> to vector<8x32xi1>
    %255 = vector.broadcast %cst_50 : f32 to vector<8x32xf32>
    %256 = arith.select %254, %249, %255 : vector<8x32xi1>, vector<8x32xf32>
    %c3 = arith.constant 3 : index
    %c0_51 = arith.constant 0 : index
    %c0_52 = arith.constant 0 : index
    %257 = vector.load %arg8[%c3, %c0_51, %c0_52] : memref<8x8x64xf32, #tpu.memory_space<vmem>>, vector<1x8x32xf32>
    %258 = vector.shape_cast %257 : vector<1x8x32xf32> to vector<8x32xf32>
    %259 = vector.shape_cast %256 : vector<8x32xf32> to vector<1x8x32xf32>
    tpu.vector_store %arg8[%c3, %c0_51, %c0_52], %259 {strides = array<i32>} : memref<8x8x64xf32, #tpu.memory_space<vmem>>, vector<1x8x32xf32>,
    %260 = vector.extract_strided_slice %16 {offsets = [4, 0, 0], sizes = [1, 8, 128], strides = [1, 1, 1]} : vector<8x8x128xf32> to vector<1x8x128xf32>
    %261 = vector.shape_cast %260 : vector<1x8x128xf32> to vector<8x128xf32>
    %cst_53 = arith.constant dense<0.000000e+00> : vector<8x128xf32>
    %262 = tpu.matmul %215, %1, %cst_53 {dimension_numbers = #tpu.dot_dimension_numbers<[1], [0], [0], [1], [0, 0, 1, 1], [], []>} : vector<8x32xf32>, vector<32x128xf32>, vector<8x128xf32> -> vector<8x128xf32>
    %263 = arith.addf %261, %262 : vector<8x128xf32>
    %264 = arith.negf %263 : vector<8x128xf32>
    %265 = math.exp %264 : vector<8x128xf32>
    %cst_54 = arith.constant 1.000000e+00 : f32
    %266 = vector.broadcast %cst_54 : f32 to vector<8x128xf32>
    %267 = arith.addf %266, %265 : vector<8x128xf32>
    %268 = arith.divf %266, %267 : vector<8x128xf32>
    %269 = math.tanh %263 : vector<8x128xf32>
    %270 = vector.extract_strided_slice %268 {offsets = [0, 0], sizes = [8, 32], strides = [1, 1]} : vector<8x128xf32> to vector<8x32xf32>
    %271 = vector.extract_strided_slice %268 {offsets = [0, 32], sizes = [8, 32], strides = [1, 1]} : vector<8x128xf32> to vector<8x32xf32>
    %272 = vector.extract_strided_slice %269 {offsets = [0, 64], sizes = [8, 32], strides = [1, 1]} : vector<8x128xf32> to vector<8x32xf32>
    %273 = vector.extract_strided_slice %268 {offsets = [0, 96], sizes = [8, 32], strides = [1, 1]} : vector<8x128xf32> to vector<8x32xf32>
    %274 = arith.mulf %271, %218 : vector<8x32xf32>
    %275 = arith.mulf %270, %272 : vector<8x32xf32>
    %276 = arith.addf %274, %275 : vector<8x32xf32>
    %277 = math.tanh %276 : vector<8x32xf32>
    %278 = arith.mulf %273, %277 : vector<8x32xf32>
    %279 = vector.extract_strided_slice %20 {offsets = [4, 0, 0], sizes = [1, 8, 1], strides = [1, 1, 1]} : vector<8x8x1xi1> to vector<1x8x1xi1>
    %280 = vector.shape_cast %279 : vector<1x8x1xi1> to vector<8x1xi1>
    %281 = vector.shape_cast %280 : vector<8x1xi1> to vector<8x1xi1>
    %282 = vector.broadcast %281 : vector<8x1xi1> to vector<8x32xi1>
    %283 = arith.select %282, %278, %215 : vector<8x32xi1>, vector<8x32xf32>
    %284 = vector.shape_cast %280 : vector<8x1xi1> to vector<8x1xi1>
    %285 = vector.broadcast %284 : vector<8x1xi1> to vector<8x32xi1>
    %286 = arith.select %285, %276, %218 : vector<8x32xi1>, vector<8x32xf32>
    %cst_55 = arith.constant 0.000000e+00 : f32
    %287 = vector.shape_cast %280 : vector<8x1xi1> to vector<8x1xi1>
    %288 = vector.broadcast %287 : vector<8x1xi1> to vector<8x32xi1>
    %289 = vector.broadcast %cst_55 : f32 to vector<8x32xf32>
    %290 = arith.select %288, %283, %289 : vector<8x32xi1>, vector<8x32xf32>
    %c4 = arith.constant 4 : index
    %c0_56 = arith.constant 0 : index
    %c32_57 = arith.constant 32 : index
    %291 = vector.load %arg8[%c4, %c0_56, %c32_57] : memref<8x8x64xf32, #tpu.memory_space<vmem>>, vector<1x8x32xf32>
    %292 = vector.shape_cast %291 : vector<1x8x32xf32> to vector<8x32xf32>
    %293 = vector.shape_cast %290 : vector<8x32xf32> to vector<1x8x32xf32>
    tpu.vector_store %arg8[%c4, %c0_56, %c32_57], %293 {strides = array<i32>} : memref<8x8x64xf32, #tpu.memory_space<vmem>>, vector<1x8x32xf32>,
    %294 = vector.extract_strided_slice %10 {offsets = [4, 0, 0], sizes = [1, 8, 128], strides = [1, 1, 1]} : vector<8x8x128xf32> to vector<1x8x128xf32>
    %295 = vector.shape_cast %294 : vector<1x8x128xf32> to vector<8x128xf32>
    %cst_58 = arith.constant dense<0.000000e+00> : vector<8x128xf32>
    %296 = tpu.matmul %249, %0, %cst_58 {dimension_numbers = #tpu.dot_dimension_numbers<[1], [0], [0], [1], [0, 0, 1, 1], [], []>} : vector<8x32xf32>, vector<32x128xf32>, vector<8x128xf32> -> vector<8x128xf32>
    %297 = arith.addf %295, %296 : vector<8x128xf32>
    %298 = arith.negf %297 : vector<8x128xf32>
    %299 = math.exp %298 : vector<8x128xf32>
    %cst_59 = arith.constant 1.000000e+00 : f32
    %300 = vector.broadcast %cst_59 : f32 to vector<8x128xf32>
    %301 = arith.addf %300, %299 : vector<8x128xf32>
    %302 = arith.divf %300, %301 : vector<8x128xf32>
    %303 = math.tanh %297 : vector<8x128xf32>
    %304 = vector.extract_strided_slice %302 {offsets = [0, 0], sizes = [8, 32], strides = [1, 1]} : vector<8x128xf32> to vector<8x32xf32>
    %305 = vector.extract_strided_slice %302 {offsets = [0, 32], sizes = [8, 32], strides = [1, 1]} : vector<8x128xf32> to vector<8x32xf32>
    %306 = vector.extract_strided_slice %303 {offsets = [0, 64], sizes = [8, 32], strides = [1, 1]} : vector<8x128xf32> to vector<8x32xf32>
    %307 = vector.extract_strided_slice %302 {offsets = [0, 96], sizes = [8, 32], strides = [1, 1]} : vector<8x128xf32> to vector<8x32xf32>
    %308 = arith.mulf %305, %252 : vector<8x32xf32>
    %309 = arith.mulf %304, %306 : vector<8x32xf32>
    %310 = arith.addf %308, %309 : vector<8x32xf32>
    %311 = math.tanh %310 : vector<8x32xf32>
    %312 = arith.mulf %307, %311 : vector<8x32xf32>
    %313 = vector.extract_strided_slice %20 {offsets = [4, 0, 0], sizes = [1, 8, 1], strides = [1, 1, 1]} : vector<8x8x1xi1> to vector<1x8x1xi1>
    %314 = vector.shape_cast %313 : vector<1x8x1xi1> to vector<8x1xi1>
    %315 = vector.shape_cast %314 : vector<8x1xi1> to vector<8x1xi1>
    %316 = vector.broadcast %315 : vector<8x1xi1> to vector<8x32xi1>
    %317 = arith.select %316, %312, %249 : vector<8x32xi1>, vector<8x32xf32>
    %318 = vector.shape_cast %314 : vector<8x1xi1> to vector<8x1xi1>
    %319 = vector.broadcast %318 : vector<8x1xi1> to vector<8x32xi1>
    %320 = arith.select %319, %310, %252 : vector<8x32xi1>, vector<8x32xf32>
    %cst_60 = arith.constant 0.000000e+00 : f32
    %321 = vector.shape_cast %314 : vector<8x1xi1> to vector<8x1xi1>
    %322 = vector.broadcast %321 : vector<8x1xi1> to vector<8x32xi1>
    %323 = vector.broadcast %cst_60 : f32 to vector<8x32xf32>
    %324 = arith.select %322, %317, %323 : vector<8x32xi1>, vector<8x32xf32>
    %c4_61 = arith.constant 4 : index
    %c0_62 = arith.constant 0 : index
    %c0_63 = arith.constant 0 : index
    %325 = vector.load %arg8[%c4_61, %c0_62, %c0_63] : memref<8x8x64xf32, #tpu.memory_space<vmem>>, vector<1x8x32xf32>
    %326 = vector.shape_cast %325 : vector<1x8x32xf32> to vector<8x32xf32>
    %327 = vector.shape_cast %324 : vector<8x32xf32> to vector<1x8x32xf32>
    tpu.vector_store %arg8[%c4_61, %c0_62, %c0_63], %327 {strides = array<i32>} : memref<8x8x64xf32, #tpu.memory_space<vmem>>, vector<1x8x32xf32>,
    %328 = vector.extract_strided_slice %16 {offsets = [3, 0, 0], sizes = [1, 8, 128], strides = [1, 1, 1]} : vector<8x8x128xf32> to vector<1x8x128xf32>
    %329 = vector.shape_cast %328 : vector<1x8x128xf32> to vector<8x128xf32>
    %cst_64 = arith.constant dense<0.000000e+00> : vector<8x128xf32>
    %330 = tpu.matmul %283, %1, %cst_64 {dimension_numbers = #tpu.dot_dimension_numbers<[1], [0], [0], [1], [0, 0, 1, 1], [], []>} : vector<8x32xf32>, vector<32x128xf32>, vector<8x128xf32> -> vector<8x128xf32>
    %331 = arith.addf %329, %330 : vector<8x128xf32>
    %332 = arith.negf %331 : vector<8x128xf32>
    %333 = math.exp %332 : vector<8x128xf32>
    %cst_65 = arith.constant 1.000000e+00 : f32
    %334 = vector.broadcast %cst_65 : f32 to vector<8x128xf32>
    %335 = arith.addf %334, %333 : vector<8x128xf32>
    %336 = arith.divf %334, %335 : vector<8x128xf32>
    %337 = math.tanh %331 : vector<8x128xf32>
    %338 = vector.extract_strided_slice %336 {offsets = [0, 0], sizes = [8, 32], strides = [1, 1]} : vector<8x128xf32> to vector<8x32xf32>
    %339 = vector.extract_strided_slice %336 {offsets = [0, 32], sizes = [8, 32], strides = [1, 1]} : vector<8x128xf32> to vector<8x32xf32>
    %340 = vector.extract_strided_slice %337 {offsets = [0, 64], sizes = [8, 32], strides = [1, 1]} : vector<8x128xf32> to vector<8x32xf32>
    %341 = vector.extract_strided_slice %336 {offsets = [0, 96], sizes = [8, 32], strides = [1, 1]} : vector<8x128xf32> to vector<8x32xf32>
    %342 = arith.mulf %339, %286 : vector<8x32xf32>
    %343 = arith.mulf %338, %340 : vector<8x32xf32>
    %344 = arith.addf %342, %343 : vector<8x32xf32>
    %345 = math.tanh %344 : vector<8x32xf32>
    %346 = arith.mulf %341, %345 : vector<8x32xf32>
    %347 = vector.extract_strided_slice %20 {offsets = [3, 0, 0], sizes = [1, 8, 1], strides = [1, 1, 1]} : vector<8x8x1xi1> to vector<1x8x1xi1>
    %348 = vector.shape_cast %347 : vector<1x8x1xi1> to vector<8x1xi1>
    %349 = vector.shape_cast %348 : vector<8x1xi1> to vector<8x1xi1>
    %350 = vector.broadcast %349 : vector<8x1xi1> to vector<8x32xi1>
    %351 = arith.select %350, %346, %283 : vector<8x32xi1>, vector<8x32xf32>
    %352 = vector.shape_cast %348 : vector<8x1xi1> to vector<8x1xi1>
    %353 = vector.broadcast %352 : vector<8x1xi1> to vector<8x32xi1>
    %354 = arith.select %353, %344, %286 : vector<8x32xi1>, vector<8x32xf32>
    %cst_66 = arith.constant 0.000000e+00 : f32
    %355 = vector.shape_cast %348 : vector<8x1xi1> to vector<8x1xi1>
    %356 = vector.broadcast %355 : vector<8x1xi1> to vector<8x32xi1>
    %357 = vector.broadcast %cst_66 : f32 to vector<8x32xf32>
    %358 = arith.select %356, %351, %357 : vector<8x32xi1>, vector<8x32xf32>
    %c3_67 = arith.constant 3 : index
    %c0_68 = arith.constant 0 : index
    %c32_69 = arith.constant 32 : index
    %359 = vector.load %arg8[%c3_67, %c0_68, %c32_69] : memref<8x8x64xf32, #tpu.memory_space<vmem>>, vector<1x8x32xf32>
    %360 = vector.shape_cast %359 : vector<1x8x32xf32> to vector<8x32xf32>
    %361 = vector.shape_cast %358 : vector<8x32xf32> to vector<1x8x32xf32>
    tpu.vector_store %arg8[%c3_67, %c0_68, %c32_69], %361 {strides = array<i32>} : memref<8x8x64xf32, #tpu.memory_space<vmem>>, vector<1x8x32xf32>,
    %362 = vector.extract_strided_slice %10 {offsets = [5, 0, 0], sizes = [1, 8, 128], strides = [1, 1, 1]} : vector<8x8x128xf32> to vector<1x8x128xf32>
    %363 = vector.shape_cast %362 : vector<1x8x128xf32> to vector<8x128xf32>
    %cst_70 = arith.constant dense<0.000000e+00> : vector<8x128xf32>
    %364 = tpu.matmul %317, %0, %cst_70 {dimension_numbers = #tpu.dot_dimension_numbers<[1], [0], [0], [1], [0, 0, 1, 1], [], []>} : vector<8x32xf32>, vector<32x128xf32>, vector<8x128xf32> -> vector<8x128xf32>
    %365 = arith.addf %363, %364 : vector<8x128xf32>
    %366 = arith.negf %365 : vector<8x128xf32>
    %367 = math.exp %366 : vector<8x128xf32>
    %cst_71 = arith.constant 1.000000e+00 : f32
    %368 = vector.broadcast %cst_71 : f32 to vector<8x128xf32>
    %369 = arith.addf %368, %367 : vector<8x128xf32>
    %370 = arith.divf %368, %369 : vector<8x128xf32>
    %371 = math.tanh %365 : vector<8x128xf32>
    %372 = vector.extract_strided_slice %370 {offsets = [0, 0], sizes = [8, 32], strides = [1, 1]} : vector<8x128xf32> to vector<8x32xf32>
    %373 = vector.extract_strided_slice %370 {offsets = [0, 32], sizes = [8, 32], strides = [1, 1]} : vector<8x128xf32> to vector<8x32xf32>
    %374 = vector.extract_strided_slice %371 {offsets = [0, 64], sizes = [8, 32], strides = [1, 1]} : vector<8x128xf32> to vector<8x32xf32>
    %375 = vector.extract_strided_slice %370 {offsets = [0, 96], sizes = [8, 32], strides = [1, 1]} : vector<8x128xf32> to vector<8x32xf32>
    %376 = arith.mulf %373, %320 : vector<8x32xf32>
    %377 = arith.mulf %372, %374 : vector<8x32xf32>
    %378 = arith.addf %376, %377 : vector<8x32xf32>
    %379 = math.tanh %378 : vector<8x32xf32>
    %380 = arith.mulf %375, %379 : vector<8x32xf32>
    %381 = vector.extract_strided_slice %20 {offsets = [5, 0, 0], sizes = [1, 8, 1], strides = [1, 1, 1]} : vector<8x8x1xi1> to vector<1x8x1xi1>
    %382 = vector.shape_cast %381 : vector<1x8x1xi1> to vector<8x1xi1>
    %383 = vector.shape_cast %382 : vector<8x1xi1> to vector<8x1xi1>
    %384 = vector.broadcast %383 : vector<8x1xi1> to vector<8x32xi1>
    %385 = arith.select %384, %380, %317 : vector<8x32xi1>, vector<8x32xf32>
    %386 = vector.shape_cast %382 : vector<8x1xi1> to vector<8x1xi1>
    %387 = vector.broadcast %386 : vector<8x1xi1> to vector<8x32xi1>
    %388 = arith.select %387, %378, %320 : vector<8x32xi1>, vector<8x32xf32>
    %cst_72 = arith.constant 0.000000e+00 : f32
    %389 = vector.shape_cast %382 : vector<8x1xi1> to vector<8x1xi1>
    %390 = vector.broadcast %389 : vector<8x1xi1> to vector<8x32xi1>
    %391 = vector.broadcast %cst_72 : f32 to vector<8x32xf32>
    %392 = arith.select %390, %385, %391 : vector<8x32xi1>, vector<8x32xf32>
    %c5_73 = arith.constant 5 : index
    %c0_74 = arith.constant 0 : index
    %c0_75 = arith.constant 0 : index
    %393 = vector.load %arg8[%c5_73, %c0_74, %c0_75] : memref<8x8x64xf32, #tpu.memory_space<vmem>>, vector<1x8x32xf32>
    %394 = vector.shape_cast %393 : vector<1x8x32xf32> to vector<8x32xf32>
    %395 = vector.shape_cast %392 : vector<8x32xf32> to vector<1x8x32xf32>
    tpu.vector_store %arg8[%c5_73, %c0_74, %c0_75], %395 {strides = array<i32>} : memref<8x8x64xf32, #tpu.memory_space<vmem>>, vector<1x8x32xf32>,
    %396 = vector.extract_strided_slice %16 {offsets = [2, 0, 0], sizes = [1, 8, 128], strides = [1, 1, 1]} : vector<8x8x128xf32> to vector<1x8x128xf32>
    %397 = vector.shape_cast %396 : vector<1x8x128xf32> to vector<8x128xf32>
    %cst_76 = arith.constant dense<0.000000e+00> : vector<8x128xf32>
    %398 = tpu.matmul %351, %1, %cst_76 {dimension_numbers = #tpu.dot_dimension_numbers<[1], [0], [0], [1], [0, 0, 1, 1], [], []>} : vector<8x32xf32>, vector<32x128xf32>, vector<8x128xf32> -> vector<8x128xf32>
    %399 = arith.addf %397, %398 : vector<8x128xf32>
    %400 = arith.negf %399 : vector<8x128xf32>
    %401 = math.exp %400 : vector<8x128xf32>
    %cst_77 = arith.constant 1.000000e+00 : f32
    %402 = vector.broadcast %cst_77 : f32 to vector<8x128xf32>
    %403 = arith.addf %402, %401 : vector<8x128xf32>
    %404 = arith.divf %402, %403 : vector<8x128xf32>
    %405 = math.tanh %399 : vector<8x128xf32>
    %406 = vector.extract_strided_slice %404 {offsets = [0, 0], sizes = [8, 32], strides = [1, 1]} : vector<8x128xf32> to vector<8x32xf32>
    %407 = vector.extract_strided_slice %404 {offsets = [0, 32], sizes = [8, 32], strides = [1, 1]} : vector<8x128xf32> to vector<8x32xf32>
    %408 = vector.extract_strided_slice %405 {offsets = [0, 64], sizes = [8, 32], strides = [1, 1]} : vector<8x128xf32> to vector<8x32xf32>
    %409 = vector.extract_strided_slice %404 {offsets = [0, 96], sizes = [8, 32], strides = [1, 1]} : vector<8x128xf32> to vector<8x32xf32>
    %410 = arith.mulf %407, %354 : vector<8x32xf32>
    %411 = arith.mulf %406, %408 : vector<8x32xf32>
    %412 = arith.addf %410, %411 : vector<8x32xf32>
    %413 = math.tanh %412 : vector<8x32xf32>
    %414 = arith.mulf %409, %413 : vector<8x32xf32>
    %415 = vector.extract_strided_slice %20 {offsets = [2, 0, 0], sizes = [1, 8, 1], strides = [1, 1, 1]} : vector<8x8x1xi1> to vector<1x8x1xi1>
    %416 = vector.shape_cast %415 : vector<1x8x1xi1> to vector<8x1xi1>
    %417 = vector.shape_cast %416 : vector<8x1xi1> to vector<8x1xi1>
    %418 = vector.broadcast %417 : vector<8x1xi1> to vector<8x32xi1>
    %419 = arith.select %418, %414, %351 : vector<8x32xi1>, vector<8x32xf32>
    %420 = vector.shape_cast %416 : vector<8x1xi1> to vector<8x1xi1>
    %421 = vector.broadcast %420 : vector<8x1xi1> to vector<8x32xi1>
    %422 = arith.select %421, %412, %354 : vector<8x32xi1>, vector<8x32xf32>
    %cst_78 = arith.constant 0.000000e+00 : f32
    %423 = vector.shape_cast %416 : vector<8x1xi1> to vector<8x1xi1>
    %424 = vector.broadcast %423 : vector<8x1xi1> to vector<8x32xi1>
    %425 = vector.broadcast %cst_78 : f32 to vector<8x32xf32>
    %426 = arith.select %424, %419, %425 : vector<8x32xi1>, vector<8x32xf32>
    %c2_79 = arith.constant 2 : index
    %c0_80 = arith.constant 0 : index
    %c32_81 = arith.constant 32 : index
    %427 = vector.load %arg8[%c2_79, %c0_80, %c32_81] : memref<8x8x64xf32, #tpu.memory_space<vmem>>, vector<1x8x32xf32>
    %428 = vector.shape_cast %427 : vector<1x8x32xf32> to vector<8x32xf32>
    %429 = vector.shape_cast %426 : vector<8x32xf32> to vector<1x8x32xf32>
    tpu.vector_store %arg8[%c2_79, %c0_80, %c32_81], %429 {strides = array<i32>} : memref<8x8x64xf32, #tpu.memory_space<vmem>>, vector<1x8x32xf32>,
    %430 = vector.extract_strided_slice %10 {offsets = [6, 0, 0], sizes = [1, 8, 128], strides = [1, 1, 1]} : vector<8x8x128xf32> to vector<1x8x128xf32>
    %431 = vector.shape_cast %430 : vector<1x8x128xf32> to vector<8x128xf32>
    %cst_82 = arith.constant dense<0.000000e+00> : vector<8x128xf32>
    %432 = tpu.matmul %385, %0, %cst_82 {dimension_numbers = #tpu.dot_dimension_numbers<[1], [0], [0], [1], [0, 0, 1, 1], [], []>} : vector<8x32xf32>, vector<32x128xf32>, vector<8x128xf32> -> vector<8x128xf32>
    %433 = arith.addf %431, %432 : vector<8x128xf32>
    %434 = arith.negf %433 : vector<8x128xf32>
    %435 = math.exp %434 : vector<8x128xf32>
    %cst_83 = arith.constant 1.000000e+00 : f32
    %436 = vector.broadcast %cst_83 : f32 to vector<8x128xf32>
    %437 = arith.addf %436, %435 : vector<8x128xf32>
    %438 = arith.divf %436, %437 : vector<8x128xf32>
    %439 = math.tanh %433 : vector<8x128xf32>
    %440 = vector.extract_strided_slice %438 {offsets = [0, 0], sizes = [8, 32], strides = [1, 1]} : vector<8x128xf32> to vector<8x32xf32>
    %441 = vector.extract_strided_slice %438 {offsets = [0, 32], sizes = [8, 32], strides = [1, 1]} : vector<8x128xf32> to vector<8x32xf32>
    %442 = vector.extract_strided_slice %439 {offsets = [0, 64], sizes = [8, 32], strides = [1, 1]} : vector<8x128xf32> to vector<8x32xf32>
    %443 = vector.extract_strided_slice %438 {offsets = [0, 96], sizes = [8, 32], strides = [1, 1]} : vector<8x128xf32> to vector<8x32xf32>
    %444 = arith.mulf %441, %388 : vector<8x32xf32>
    %445 = arith.mulf %440, %442 : vector<8x32xf32>
    %446 = arith.addf %444, %445 : vector<8x32xf32>
    %447 = math.tanh %446 : vector<8x32xf32>
    %448 = arith.mulf %443, %447 : vector<8x32xf32>
    %449 = vector.extract_strided_slice %20 {offsets = [6, 0, 0], sizes = [1, 8, 1], strides = [1, 1, 1]} : vector<8x8x1xi1> to vector<1x8x1xi1>
    %450 = vector.shape_cast %449 : vector<1x8x1xi1> to vector<8x1xi1>
    %451 = vector.shape_cast %450 : vector<8x1xi1> to vector<8x1xi1>
    %452 = vector.broadcast %451 : vector<8x1xi1> to vector<8x32xi1>
    %453 = arith.select %452, %448, %385 : vector<8x32xi1>, vector<8x32xf32>
    %454 = vector.shape_cast %450 : vector<8x1xi1> to vector<8x1xi1>
    %455 = vector.broadcast %454 : vector<8x1xi1> to vector<8x32xi1>
    %456 = arith.select %455, %446, %388 : vector<8x32xi1>, vector<8x32xf32>
    %cst_84 = arith.constant 0.000000e+00 : f32
    %457 = vector.shape_cast %450 : vector<8x1xi1> to vector<8x1xi1>
    %458 = vector.broadcast %457 : vector<8x1xi1> to vector<8x32xi1>
    %459 = vector.broadcast %cst_84 : f32 to vector<8x32xf32>
    %460 = arith.select %458, %453, %459 : vector<8x32xi1>, vector<8x32xf32>
    %c6_85 = arith.constant 6 : index
    %c0_86 = arith.constant 0 : index
    %c0_87 = arith.constant 0 : index
    %461 = vector.load %arg8[%c6_85, %c0_86, %c0_87] : memref<8x8x64xf32, #tpu.memory_space<vmem>>, vector<1x8x32xf32>
    %462 = vector.shape_cast %461 : vector<1x8x32xf32> to vector<8x32xf32>
    %463 = vector.shape_cast %460 : vector<8x32xf32> to vector<1x8x32xf32>
    tpu.vector_store %arg8[%c6_85, %c0_86, %c0_87], %463 {strides = array<i32>} : memref<8x8x64xf32, #tpu.memory_space<vmem>>, vector<1x8x32xf32>,
    %464 = vector.extract_strided_slice %16 {offsets = [1, 0, 0], sizes = [1, 8, 128], strides = [1, 1, 1]} : vector<8x8x128xf32> to vector<1x8x128xf32>
    %465 = vector.shape_cast %464 : vector<1x8x128xf32> to vector<8x128xf32>
    %cst_88 = arith.constant dense<0.000000e+00> : vector<8x128xf32>
    %466 = tpu.matmul %419, %1, %cst_88 {dimension_numbers = #tpu.dot_dimension_numbers<[1], [0], [0], [1], [0, 0, 1, 1], [], []>} : vector<8x32xf32>, vector<32x128xf32>, vector<8x128xf32> -> vector<8x128xf32>
    %467 = arith.addf %465, %466 : vector<8x128xf32>
    %468 = arith.negf %467 : vector<8x128xf32>
    %469 = math.exp %468 : vector<8x128xf32>
    %cst_89 = arith.constant 1.000000e+00 : f32
    %470 = vector.broadcast %cst_89 : f32 to vector<8x128xf32>
    %471 = arith.addf %470, %469 : vector<8x128xf32>
    %472 = arith.divf %470, %471 : vector<8x128xf32>
    %473 = math.tanh %467 : vector<8x128xf32>
    %474 = vector.extract_strided_slice %472 {offsets = [0, 0], sizes = [8, 32], strides = [1, 1]} : vector<8x128xf32> to vector<8x32xf32>
    %475 = vector.extract_strided_slice %472 {offsets = [0, 32], sizes = [8, 32], strides = [1, 1]} : vector<8x128xf32> to vector<8x32xf32>
    %476 = vector.extract_strided_slice %473 {offsets = [0, 64], sizes = [8, 32], strides = [1, 1]} : vector<8x128xf32> to vector<8x32xf32>
    %477 = vector.extract_strided_slice %472 {offsets = [0, 96], sizes = [8, 32], strides = [1, 1]} : vector<8x128xf32> to vector<8x32xf32>
    %478 = arith.mulf %475, %422 : vector<8x32xf32>
    %479 = arith.mulf %474, %476 : vector<8x32xf32>
    %480 = arith.addf %478, %479 : vector<8x32xf32>
    %481 = math.tanh %480 : vector<8x32xf32>
    %482 = arith.mulf %477, %481 : vector<8x32xf32>
    %483 = vector.extract_strided_slice %20 {offsets = [1, 0, 0], sizes = [1, 8, 1], strides = [1, 1, 1]} : vector<8x8x1xi1> to vector<1x8x1xi1>
    %484 = vector.shape_cast %483 : vector<1x8x1xi1> to vector<8x1xi1>
    %485 = vector.shape_cast %484 : vector<8x1xi1> to vector<8x1xi1>
    %486 = vector.broadcast %485 : vector<8x1xi1> to vector<8x32xi1>
    %487 = arith.select %486, %482, %419 : vector<8x32xi1>, vector<8x32xf32>
    %488 = vector.shape_cast %484 : vector<8x1xi1> to vector<8x1xi1>
    %489 = vector.broadcast %488 : vector<8x1xi1> to vector<8x32xi1>
    %490 = arith.select %489, %480, %422 : vector<8x32xi1>, vector<8x32xf32>
    %cst_90 = arith.constant 0.000000e+00 : f32
    %491 = vector.shape_cast %484 : vector<8x1xi1> to vector<8x1xi1>
    %492 = vector.broadcast %491 : vector<8x1xi1> to vector<8x32xi1>
    %493 = vector.broadcast %cst_90 : f32 to vector<8x32xf32>
    %494 = arith.select %492, %487, %493 : vector<8x32xi1>, vector<8x32xf32>
    %c1_91 = arith.constant 1 : index
    %c0_92 = arith.constant 0 : index
    %c32_93 = arith.constant 32 : index
    %495 = vector.load %arg8[%c1_91, %c0_92, %c32_93] : memref<8x8x64xf32, #tpu.memory_space<vmem>>, vector<1x8x32xf32>
    %496 = vector.shape_cast %495 : vector<1x8x32xf32> to vector<8x32xf32>
    %497 = vector.shape_cast %494 : vector<8x32xf32> to vector<1x8x32xf32>
    tpu.vector_store %arg8[%c1_91, %c0_92, %c32_93], %497 {strides = array<i32>} : memref<8x8x64xf32, #tpu.memory_space<vmem>>, vector<1x8x32xf32>,
    %498 = vector.extract_strided_slice %10 {offsets = [7, 0, 0], sizes = [1, 8, 128], strides = [1, 1, 1]} : vector<8x8x128xf32> to vector<1x8x128xf32>
    %499 = vector.shape_cast %498 : vector<1x8x128xf32> to vector<8x128xf32>
    %cst_94 = arith.constant dense<0.000000e+00> : vector<8x128xf32>
    %500 = tpu.matmul %453, %0, %cst_94 {dimension_numbers = #tpu.dot_dimension_numbers<[1], [0], [0], [1], [0, 0, 1, 1], [], []>} : vector<8x32xf32>, vector<32x128xf32>, vector<8x128xf32> -> vector<8x128xf32>
    %501 = arith.addf %499, %500 : vector<8x128xf32>
    %502 = arith.negf %501 : vector<8x128xf32>
    %503 = math.exp %502 : vector<8x128xf32>
    %cst_95 = arith.constant 1.000000e+00 : f32
    %504 = vector.broadcast %cst_95 : f32 to vector<8x128xf32>
    %505 = arith.addf %504, %503 : vector<8x128xf32>
    %506 = arith.divf %504, %505 : vector<8x128xf32>
    %507 = math.tanh %501 : vector<8x128xf32>
    %508 = vector.extract_strided_slice %506 {offsets = [0, 0], sizes = [8, 32], strides = [1, 1]} : vector<8x128xf32> to vector<8x32xf32>
    %509 = vector.extract_strided_slice %506 {offsets = [0, 32], sizes = [8, 32], strides = [1, 1]} : vector<8x128xf32> to vector<8x32xf32>
    %510 = vector.extract_strided_slice %507 {offsets = [0, 64], sizes = [8, 32], strides = [1, 1]} : vector<8x128xf32> to vector<8x32xf32>
    %511 = vector.extract_strided_slice %506 {offsets = [0, 96], sizes = [8, 32], strides = [1, 1]} : vector<8x128xf32> to vector<8x32xf32>
    %512 = arith.mulf %509, %456 : vector<8x32xf32>
    %513 = arith.mulf %508, %510 : vector<8x32xf32>
    %514 = arith.addf %512, %513 : vector<8x32xf32>
    %515 = math.tanh %514 : vector<8x32xf32>
    %516 = arith.mulf %511, %515 : vector<8x32xf32>
    %517 = vector.extract_strided_slice %20 {offsets = [7, 0, 0], sizes = [1, 8, 1], strides = [1, 1, 1]} : vector<8x8x1xi1> to vector<1x8x1xi1>
    %518 = vector.shape_cast %517 : vector<1x8x1xi1> to vector<8x1xi1>
    %519 = vector.shape_cast %518 : vector<8x1xi1> to vector<8x1xi1>
    %520 = vector.broadcast %519 : vector<8x1xi1> to vector<8x32xi1>
    %521 = arith.select %520, %516, %453 : vector<8x32xi1>, vector<8x32xf32>
    %cst_96 = arith.constant 0.000000e+00 : f32
    %522 = vector.shape_cast %518 : vector<8x1xi1> to vector<8x1xi1>
    %523 = vector.broadcast %522 : vector<8x1xi1> to vector<8x32xi1>
    %524 = vector.broadcast %cst_96 : f32 to vector<8x32xf32>
    %525 = arith.select %523, %521, %524 : vector<8x32xi1>, vector<8x32xf32>
    %c7_97 = arith.constant 7 : index
    %c0_98 = arith.constant 0 : index
    %c0_99 = arith.constant 0 : index
    %526 = vector.load %arg8[%c7_97, %c0_98, %c0_99] : memref<8x8x64xf32, #tpu.memory_space<vmem>>, vector<1x8x32xf32>
    %527 = vector.shape_cast %526 : vector<1x8x32xf32> to vector<8x32xf32>
    %528 = vector.shape_cast %525 : vector<8x32xf32> to vector<1x8x32xf32>
    tpu.vector_store %arg8[%c7_97, %c0_98, %c0_99], %528 {strides = array<i32>} : memref<8x8x64xf32, #tpu.memory_space<vmem>>, vector<1x8x32xf32>,
    %529 = vector.extract_strided_slice %16 {offsets = [0, 0, 0], sizes = [1, 8, 128], strides = [1, 1, 1]} : vector<8x8x128xf32> to vector<1x8x128xf32>
    %530 = vector.shape_cast %529 : vector<1x8x128xf32> to vector<8x128xf32>
    %cst_100 = arith.constant dense<0.000000e+00> : vector<8x128xf32>
    %531 = tpu.matmul %487, %1, %cst_100 {dimension_numbers = #tpu.dot_dimension_numbers<[1], [0], [0], [1], [0, 0, 1, 1], [], []>} : vector<8x32xf32>, vector<32x128xf32>, vector<8x128xf32> -> vector<8x128xf32>
    %532 = arith.addf %530, %531 : vector<8x128xf32>
    %533 = arith.negf %532 : vector<8x128xf32>
    %534 = math.exp %533 : vector<8x128xf32>
    %cst_101 = arith.constant 1.000000e+00 : f32
    %535 = vector.broadcast %cst_101 : f32 to vector<8x128xf32>
    %536 = arith.addf %535, %534 : vector<8x128xf32>
    %537 = arith.divf %535, %536 : vector<8x128xf32>
    %538 = math.tanh %532 : vector<8x128xf32>
    %539 = vector.extract_strided_slice %537 {offsets = [0, 0], sizes = [8, 32], strides = [1, 1]} : vector<8x128xf32> to vector<8x32xf32>
    %540 = vector.extract_strided_slice %537 {offsets = [0, 32], sizes = [8, 32], strides = [1, 1]} : vector<8x128xf32> to vector<8x32xf32>
    %541 = vector.extract_strided_slice %538 {offsets = [0, 64], sizes = [8, 32], strides = [1, 1]} : vector<8x128xf32> to vector<8x32xf32>
    %542 = vector.extract_strided_slice %537 {offsets = [0, 96], sizes = [8, 32], strides = [1, 1]} : vector<8x128xf32> to vector<8x32xf32>
    %543 = arith.mulf %540, %490 : vector<8x32xf32>
    %544 = arith.mulf %539, %541 : vector<8x32xf32>
    %545 = arith.addf %543, %544 : vector<8x32xf32>
    %546 = math.tanh %545 : vector<8x32xf32>
    %547 = arith.mulf %542, %546 : vector<8x32xf32>
    %548 = vector.extract_strided_slice %20 {offsets = [0, 0, 0], sizes = [1, 8, 1], strides = [1, 1, 1]} : vector<8x8x1xi1> to vector<1x8x1xi1>
    %549 = vector.shape_cast %548 : vector<1x8x1xi1> to vector<8x1xi1>
    %550 = vector.shape_cast %549 : vector<8x1xi1> to vector<8x1xi1>
    %551 = vector.broadcast %550 : vector<8x1xi1> to vector<8x32xi1>
    %552 = arith.select %551, %547, %487 : vector<8x32xi1>, vector<8x32xf32>
    %cst_102 = arith.constant 0.000000e+00 : f32
    %553 = vector.shape_cast %549 : vector<8x1xi1> to vector<8x1xi1>
    %554 = vector.broadcast %553 : vector<8x1xi1> to vector<8x32xi1>
    %555 = vector.broadcast %cst_102 : f32 to vector<8x32xf32>
    %556 = arith.select %554, %552, %555 : vector<8x32xi1>, vector<8x32xf32>
    %c0_103 = arith.constant 0 : index
    %c0_104 = arith.constant 0 : index
    %c32_105 = arith.constant 32 : index
    %557 = vector.load %arg8[%c0_103, %c0_104, %c32_105] : memref<8x8x64xf32, #tpu.memory_space<vmem>>, vector<1x8x32xf32>
    %558 = vector.shape_cast %557 : vector<1x8x32xf32> to vector<8x32xf32>
    %559 = vector.shape_cast %556 : vector<8x32xf32> to vector<1x8x32xf32>
    tpu.vector_store %arg8[%c0_103, %c0_104, %c32_105], %559 {strides = array<i32>} : memref<8x8x64xf32, #tpu.memory_space<vmem>>, vector<1x8x32xf32>,
    return
  }
}

</mosaic_0001>

<bundles_post_ra>
// kernel: tpu_custom_call.1
= control target key start
LH: loop header
LB: loop body
LE: loop exit
PB: predicated region body
PF: predicated region fallthrough
CT: control target
= control target key end

     0   :  { %13 = vsyncpa [#allocation3], 0  ;;  %s3670_s0 = inlined_call_operand.hbm [shape: f32[8,8,32], index: 0, kind: input, shape index: {}]   ;;  %s3671_s1 = inlined_call_operand.vmem [shape: s32[8,1], index: 1, kind: input, shape index: {}]   ;;  %s3672_s2 = inlined_call_operand.hbm [shape: f32[32,128], index: 2, kind: input, shape index: {}]   ;;  %s3673_s3 = inlined_call_operand.hbm [shape: f32[32,128], index: 3, kind: input, shape index: {}]   ;;  %s3674_s4 = inlined_call_operand.vmem [shape: f32[1,128], index: 4, kind: input, shape index: {}]   ;;  %s3675_s5 = inlined_call_operand.hbm [shape: f32[32,128], index: 5, kind: input, shape index: {}]   ;;  %s3676_s6 = inlined_call_operand.hbm [shape: f32[32,128], index: 6, kind: input, shape index: {}]   ;;  %s3677_s7 = inlined_call_operand.vmem [shape: f32[1,128], index: 7, kind: input, shape index: {}]   ;;  %s3678_s8 = inlined_call_operand.hbm [shape: f32[8,8,64], index: 8, kind: output, shape index: {}]  }
   0x1   :  { %14 = vsyncpa [#allocation6], 0 }
   0x2   :  { %15 = vsyncpa [#allocation9], 0 }
   0x3   :  { %16 = vsyncpa [#allocation4], 0  ;;  %s2922_s27 = smov [#allocation5]   ;;  %s2923_s29 = smov [#allocation8]  }
   0x4   :  { %s36_s28 = sshll.u32 %s2922_s27, 4  ;;  %s62_s30 = sshll.u32 %s2923_s29, 4  ;;  %s37_s28 = int_to_ptr.vmem [resolvable:$true] %s36_s28  ;;  %s2981_s30 = int_to_ptr.vmem [resolvable:$true] %s62_s30 }
   0x5   :  { %s2782_s11 = scalar_lea.hbm %s3672_s2, 512 }
   0x6   :  { %p2783_p0 = scmp.ne.s32.totalorder %s3672_s2, %s2782_s11  ;;  %p2786_p1 = scmp.lt.u32.totalorder %s2782_s11, %s3672_s2 }
   0x8   :  { %p2788_p2 = pnand %p2786_p1, %p2783_p0 }
   0xa   :  { %2791 = shalt.err (!%p2788_p2)
}
   0xb   :  { %s2792_s16 = scalar_lea.vmem %s37_s28, 512  ;;  %p2797_p4 = scmp.lt.s32.totalorder %s37_s28, %s37_s28 }
   0xc   :  { %p2793_p3 = scmp.ne.s32.totalorder %s37_s28, %s2792_s16  ;;  %p2798_p5 = scmp.lt.s32.totalorder %s2792_s16, %s2792_s16 }
   0xe   :  { %p2799_p6 = por %p2798_p5, %p2797_p4 }
  0x10   :  { %p2800_p7 = pnand %p2799_p6, %p2793_p3 }
  0x12   :  { %2803 = shalt.err (!%p2800_p7)
}
  0x13   :  { %s2924_s17 = smov 128   ;;  %s2925_s18 = smov 8  }
  0x14   :  { %42 = dma.hbm_to_vmem [thread:$0]  %s3672_s2, 512, %s37_s28, [#allocation6], %s2924_s17, %s2924_s17, %s2925_s18  }
  0x15   :  { %s2804_s23 = scalar_lea.hbm %s3675_s5, 512 }
  0x16   :  { %p2805_p8 = scmp.ne.s32.totalorder %s3675_s5, %s2804_s23  ;;  %p2808_p9 = scmp.lt.u32.totalorder %s2804_s23, %s3675_s5 }
  0x18   :  { %p2810_p10 = pnand %p2808_p9, %p2805_p8 }
  0x1a   :  { %2813 = shalt.err (!%p2810_p10)
}
  0x1b   :  { %s2814_s29 = scalar_lea.vmem %s2981_s30, 512  ;;  %p2819_p12 = scmp.lt.s32.totalorder %s2981_s30, %s2981_s30 }
  0x1c   :  { %p2815_p11 = scmp.ne.s32.totalorder %s2981_s30, %s2814_s29  ;;  %p2820_p13 = scmp.lt.s32.totalorder %s2814_s29, %s2814_s29 }
  0x1e   :  { %p2821_p0 = por %p2820_p13, %p2819_p12 }
  0x20   :  { %p2822_p1 = pnand %p2821_p0, %p2815_p11 }
  0x22   :  { %2825 = shalt.err (!%p2822_p1)
}
  0x23   :  { %68 = dma.hbm_to_vmem [thread:$0]  %s3675_s5, 512, %s2981_s30, [#allocation9], %s2924_s17, %s2924_s17, %s2925_s18  }
  0x24   :  { %s2926_s9 = smov [#allocation2]   ;;  %s2927_s11 = smov [#allocation7]  }
  0x25   :  { %s22_s10 = sshll.u32 %s2926_s9, 4  ;;  %s48_s12 = sshll.u32 %s2927_s11, 4  ;;  %s23_s10 = int_to_ptr.vmem [resolvable:$true] %s22_s10  ;;  %s3018_s12 = int_to_ptr.vmem [resolvable:$true] %s48_s12 }
  0x26   :  { %s2826_s15 = scalar_lea.hbm %s3670_s0, 1024 }
  0x27   :  { %p2827_p2 = scmp.ne.s32.totalorder %s3670_s0, %s2826_s15  ;;  %p2830_p3 = scmp.lt.u32.totalorder %s2826_s15, %s3670_s0 }
  0x29   :  { %p2832_p4 = pnand %p2830_p3, %p2827_p2 }
  0x2b   :  { %2835 = shalt.err (!%p2832_p4)
}
  0x2c   :  { %s2836_s5 = scalar_lea.vmem %s23_s10, 1024  ;;  %p2841_p6 = scmp.lt.s32.totalorder %s23_s10, %s23_s10 }
  0x2d   :  { %p2837_p5 = scmp.ne.s32.totalorder %s23_s10, %s2836_s5  ;;  %p2842_p7 = scmp.lt.s32.totalorder %s2836_s5, %s2836_s5 }
  0x2f   :  { %p2843_p8 = por %p2842_p7, %p2841_p6 }
  0x31   :  { %p2844_p9 = pnand %p2843_p8, %p2837_p5 }
  0x33   :  { %2847 = shalt.err (!%p2844_p9)
}
  0x34   :  { %28 = dma.hbm_to_vmem [thread:$0]  %s3670_s0, 1024, %s23_s10, [#allocation3], %s2924_s17, %s2924_s17, %s2925_s18  }
  0x35   :  { %s2848_s25 = scalar_lea.hbm %s3673_s3, 512 }
  0x36   :  { %p2849_p10 = scmp.ne.s32.totalorder %s3673_s3, %s2848_s25  ;;  %p2852_p11 = scmp.lt.u32.totalorder %s2848_s25, %s3673_s3 }
  0x38   :  { %p2854_p12 = pnand %p2852_p11, %p2849_p10 }
  0x3a   :  { %2857 = shalt.err (!%p2854_p12)
}
  0x3b   :  { %s2858_s28 = scalar_lea.vmem %s3018_s12, 512  ;;  %p2863_p0 = scmp.lt.s32.totalorder %s3018_s12, %s3018_s12 }
  0x3c   :  { %p2859_p13 = scmp.ne.s32.totalorder %s3018_s12, %s2858_s28  ;;  %p2864_p1 = scmp.lt.s32.totalorder %s2858_s28, %s2858_s28 }
  0x3e   :  { %p2865_p2 = por %p2864_p1, %p2863_p0 }
  0x40   :  { %p2866_p3 = pnand %p2865_p2, %p2859_p13 }
  0x42   :  { %2869 = shalt.err (!%p2866_p3)
}
  0x43   :  { %54 = dma.hbm_to_vmem [thread:$0]  %s3673_s3, 512, %s3018_s12, [#allocation6], %s2924_s17, %s2924_s17, %s2925_s18  }
  0x44   :  { %s2928_s10 = smov [#allocation10]   ;;  %s2870_s15 = scalar_lea.hbm %s3676_s6, 512 }
  0x45   :  { %s74_s11 = sshll.u32 %s2928_s10, 4  ;;  %p2871_p4 = scmp.ne.s32.totalorder %s3676_s6, %s2870_s15  ;;  %s75_s11 = int_to_ptr.vmem [resolvable:$true] %s74_s11 }
  0x46   :  { %p2874_p5 = scmp.lt.u32.totalorder %s2870_s15, %s3676_s6 }
  0x48   :  { %p2876_p6 = pnand %p2874_p5, %p2871_p4 }
  0x4a   :  { %2879 = shalt.err (!%p2876_p6)
}
  0x4b   :  { %s2880_s5 = scalar_lea.vmem %s75_s11, 512  ;;  %p2885_p8 = scmp.lt.s32.totalorder %s75_s11, %s75_s11 }
  0x4c   :  { %p2881_p7 = scmp.ne.s32.totalorder %s75_s11, %s2880_s5  ;;  %p2886_p9 = scmp.lt.s32.totalorder %s2880_s5, %s2880_s5 }
  0x4e   :  { %p2887_p10 = por %p2886_p9, %p2885_p8 }
  0x50   :  { %p2888_p11 = pnand %p2887_p10, %p2881_p7 }
  0x52   :  { %2891 = shalt.err (!%p2888_p11)
}
  0x53   :  { %80 = dma.hbm_to_vmem [thread:$0]  %s3676_s6, 512, %s75_s11, [#allocation9], %s2924_s17, %s2924_s17, %s2925_s18  }
  0x54   :  { %2914 = dma.done.wait [#allocation3], 1024  }
  0x55   :  { %2915 = vsyncadd [#allocation3], 4294966272 }
  0x56   :  { %2916 = dma.done.wait [#allocation6], 1024  }
  0x57   :  { %2917 = vsyncadd [#allocation6], 4294966272 }
  0x58   :  { %2918 = dma.done.wait [#allocation9], 1024  }
  0x59   :  { %2919 = vsyncadd [#allocation9], 4294966272  ;;  %v115_v0 = vld [vmem:[#allocation5] sm:$0xff]  ;;  %v116_v1 = vld [vmem:[#allocation5 + $0x8] sm:$0xff]  ;;  %vm126_vm0 = vcmask 261120   ;;  %v2929_v19 = vmov 0.0|0.0  }
  0x5a   :  { %v256_v2 = vld [vmem:[#allocation8] sm:$0xff]  ;;  %v2526_v3 = vpack.c.bf16 %v116_v1, %v115_v0  ;;  %v257_v4 = vld [vmem:[#allocation8 + $0x8] sm:$0xff]  ;;  %v117_v5 = vld [vmem:[#allocation5 + $0x10] sm:$0xff]  ;;  %vm2930_vm1 = vmmov 0   ;;  %v2931_v33 = vmov 0.0   ;;  %v2932_v34 = vmov 0  }
  0x5b   :  { %v118_v6 = vld [vmem:[#allocation5 + $0x18] sm:$0xff]  ;;  %v2534_v7 = vpack.c.bf16 %v257_v4, %v256_v2  ;;  %v107_v9 = vld [vmem:[#allocation2] sm:$0xff]  ;;  %v258_v10 = vld [vmem:[#allocation8 + $0x10] sm:$0xff]  ;;  %2652 = vset.pattern.permute.xlu0 %v2932_v34  ;;  %2653 = vset.pattern.permute.xlu1 %v2932_v34  ;;  %s2933_s24 = smov 64   ;;  %s2935_s25 = smov [#allocation11]  }
  0x5c   :  { %v2530_v8 = vpack.c.bf16 %v118_v6, %v117_v5  ;;  %v259_v11 = vld [vmem:[#allocation8 + $0x18] sm:$0xff]  ;;  %2527 = vmatprep.subr.bf16.mxu0 %v2526_v3  ;;  %2318 = vmatprep.mubr.msk.f32.mxu0 %vm126_vm0, %v107_v9  ;;  %v98_v13 = vld [vmem:[#allocation7] sm:$0xff]  ;;  %v99_v14 = vld [vmem:[#allocation7 + $0x8] sm:$0xff]  ;;  %s2144_s26 = sshll.u32 %s2935_s25, 4  ;;  %s2145_s26 = int_to_ptr.vmem [resolvable:$true] %s2144_s26 }
  0x5d   :  { %v2538_v12 = vpack.c.bf16 %v259_v11, %v258_v10  ;;  %2529 = vmatpush3.bf16.msra.mxu0 %v2526_v3  ;;  %2535 = vmatprep.subr.bf16.mxu1 %v2534_v7  ;;  %v102_v15 = vld [vmem:[#allocation10] sm:$0xff]  ;;  %v103_v16 = vld [vmem:[#allocation10 + $0x8] sm:$0xff]  ;;  %v3072_v18 = vpack.c.bf16 %v99_v14, %v98_v13  ;;  %v109_v20 = vld [vmem:[#allocation2 + $0x10] sm:$0xff]  ;;  %s2892_s27 = scalar_lea.vmem %s2145_s26, 1024  ;;  %p2897_p13 = scmp.lt.s32.totalorder %s2145_s26, %s2145_s26 }
  0x5e   :  { %2531 = vmatprep.subr.bf16.mxu0 %v2530_v8  ;;  %2537 = vmatpush3.bf16.msra.mxu1 %v2534_v7  ;;  %v108_v17 = vld [vmem:[#allocation2 + $0x8] sm:$0xff]  ;;  %v100_v21 = vld [vmem:[#allocation7 + $0x10] sm:$0xff]  ;;  %v101_v22 = vld [vmem:[#allocation7 + $0x18] sm:$0xff]  ;;  %v3076_v23 = vpack.c.bf16 %v103_v16, %v102_v15  ;;  %p2893_p12 = scmp.ne.s32.totalorder %s2145_s26, %s2892_s27  ;;  %p2898_p0 = scmp.lt.s32.totalorder %s2892_s27, %s2892_s27 }
  0x5f   :  { %2539 = vmatprep.subr.bf16.mxu1 %v2538_v12  ;;  %2338 = vmatprep.mubr.msk.f32.mxu1 %vm126_vm0, %v107_v9  ;;  %v104_v24 = vld [vmem:[#allocation10 + $0x10] sm:$0xff]  ;;  %v105_v25 = vld [vmem:[#allocation10 + $0x18] sm:$0xff]  ;;  %v3081_v27 = vpack.c.bf16 %v101_v22, %v100_v21  ;;  %v111_v28 = vld [vmem:[#allocation2 + $0x20] sm:$0xff] }
  0x60   :  { %v110_v26 = vld [vmem:[#allocation2 + $0x18] sm:$0xff]  ;;  %v3087_v29 = vpack.c.bf16 %v105_v25, %v104_v24  ;;  %v112_v30 = vld [vmem:[#allocation2 + $0x28] sm:$0xff]  ;;  %v113_v31 = vld [vmem:[#allocation2 + $0x30] sm:$0xff]  ;;  %p2899_p1 = por %p2898_p0, %p2897_p13 }
  0x61   :  { %2533 = vmatpush3.bf16.msra.mxu0 %v2530_v8  ;;  %v114_v32 = vld [vmem:[#allocation2 + $0x38] sm:$0xff]  ;;  %v2158_v35 = vld [vmem:[%s3674_s4] ss:$0 sm:$0xff] }
  0x62   :  { %2541 = vmatpush3.bf16.msra.mxu1 %v2538_v12  ;;  %2542 = vmatprep.subr.bf16.mxu0 %v2929_v19  ;;  %v2167_v37 = vld [vmem:[%s3677_s7] ss:$0 sm:$0xff]  ;;  %p2900_p2 = pnand %p2899_p1, %p2893_p12 }
  0x63   :  { %2548 = vmatprep.subr.bf16.mxu1 %v2929_v19  ;;  %v3161_v12 = vld [vmem:[%s3671_s1] sm:$0xff]  ;;  %s2934_s1 = smov 32  }
  0x64   :  { %2319 = vmatmul.mubr.msk.f32.vlgmr.msra.gmra.mrb[0].mxu0 %vm126_vm0, %v108_v17  ;;  %vm372_vm2 = vcmp.gt.s32.totalorder %v3161_v12, 0  ;;  %vm379_vm3 = vcmp.gt.s32.totalorder %v3161_v12, 7  ;;  %vm373_vm6 = vcmp.gt.s32.totalorder %v3161_v12, 1  ;;  %vm378_vm7 = vcmp.gt.s32.totalorder %v3161_v12, 6 }
  0x65   :  { %2544 = vmatpush3.bf16.msra.mxu0 %v3072_v18  ;;  %2321 = vmatprep.mubr.msk.f32.mxu0 %vm126_vm0, %v109_v20  ;;  %v478_v14 = vsel %vm372_vm2, 1, %v2932_v34  ;;  %vm374_vm10 = vcmp.gt.s32.totalorder %v3161_v12, 2  ;;  %vm377_vm11 = vcmp.gt.s32.totalorder %v3161_v12, 5  ;;  %vm375_vm14 = vcmp.gt.s32.totalorder %v3161_v12, 3 }
  0x66   :  { %2339 = vmatmul.mubr.msk.f32.vlgmr.msra.gmra.mrb[0].mxu1 %vm126_vm0, %v108_v17  ;;  %2545 = vmatprep.subr.bf16.mxu0 %v2929_v19  ;;  %vm376_vm15 = vcmp.gt.s32.totalorder %v3161_v12, 4 }
  0x67   :  { %2550 = vmatpush3.bf16.msra.mxu1 %v3076_v23  ;;  %2341 = vmatprep.mubr.msk.f32.mxu1 %vm126_vm0, %v109_v20 }
  0x68   :  { %2322 = vmatmul.mubr.msk.f32.gmra.mrb[2].mxu0 %vm126_vm0, %v110_v26  ;;  %2551 = vmatprep.subr.bf16.mxu1 %v2929_v19 }
  0x69   :  { %2324 = vmatprep.mubr.msk.f32.mxu0 %vm126_vm0, %v111_v28  ;;  %2547 = vmatpush3.bf16.msra.mxu0 %v3081_v27 }
  0x6a   :  { %2342 = vmatmul.mubr.msk.f32.gmra.mrb[2].mxu1 %vm126_vm0, %v110_v26  ;;  %2554 = vmatprep.subr.bf16.mxu0 %v2929_v19 }
  0x6b   :  { %2344 = vmatprep.mubr.msk.f32.mxu1 %vm126_vm0, %v111_v28  ;;  %2553 = vmatpush3.bf16.msra.mxu1 %v3087_v29 }
  0x6c   :  { %2325 = vmatmul.mubr.msk.f32.gmra.mrb[4].mxu0 %vm126_vm0, %v112_v30  ;;  %2560 = vmatprep.subr.bf16.mxu1 %v2929_v19 }
  0x6d   :  { %2327 = vmatprep.mubr.msk.f32.mxu0 %vm126_vm0, %v113_v31 }
  0x6e   :  { %2345 = vmatmul.mubr.msk.f32.gmra.mrb[4].mxu1 %vm126_vm0, %v112_v30 }
  0x6f   :  { %2347 = vmatprep.mubr.msk.f32.mxu1 %vm126_vm0, %v113_v31 }
  0x70   :  { %2328 = vmatmul.mubr.msk.f32.gmra.mrb[6].mxu0 %vm126_vm0, %v114_v32 }
  0x71   :  { %2358 = vmatprep.mubr.msk.f32.mxu0 %vm2930_vm1, %v2931_v33 }
  0x72   :  { %2348 = vmatmul.mubr.msk.f32.gmra.mrb[6].mxu1 %vm126_vm0, %v114_v32  ;;  %v585_v32 = vsel %vm379_vm3, 1, %v2932_v34 }
  0x73   :  { %2369 = vmatprep.mubr.msk.f32.mxu1 %vm2930_vm1, %v2931_v33 }
  0x74   :  { %2359 = vmatmul.mubr.f32.vlgmr.msra.gmra.mrb[8].mxu0 %v2931_v33 }
  0x75   :  { %2556 = vmatpush3.bf16.msra.mxu0 %v3072_v18  ;;  %2380 = vmatprep.mubr.msk.f32.mxu0 %vm2930_vm1, %v2931_v33 }
  0x76   :  { %2370 = vmatmul.mubr.f32.vlgmr.msra.gmra.mrb[8].mxu1 %v2931_v33  ;;  %2557 = vmatprep.subr.bf16.mxu0 %v2929_v19 }
  0x77   :  { %2562 = vmatpush3.bf16.msra.mxu1 %v3076_v23  ;;  %2391 = vmatprep.mubr.msk.f32.mxu1 %vm2930_vm1, %v2931_v33 }
  0x78   :  { %2563 = vmatprep.subr.bf16.mxu1 %v2929_v19 }
  0x79   :  { %2559 = vmatpush3.bf16.msra.mxu0 %v3081_v27 }
  0x7a   :  { %2566 = vmatprep.subr.bf16.mxu0 %v2929_v19 }
  0x7b   :  { %2565 = vmatpush3.bf16.msra.mxu1 %v3087_v29 }
  0x7c   :  { %2572 = vmatprep.subr.bf16.mxu1 %v2929_v19 }
 0x137   :  { %v2320_v36 = vpop.f32.mrb[0].mxu0 }
 0x138   :  { %v3130_v38 = vadd.f32 %v2320_v36, %v2158_v35  ;;  %v217_v39 = vpop.f32.mrb[1].mxu0 }
 0x139   :  { %v2340_v40 = vpop.f32.mrb[0].mxu1  ;;  %v218_v1 = vadd.f32 %v2158_v35, %v217_v39 }
 0x13a   :  { %v3132_v41 = vadd.f32 %v2340_v40, %v2167_v37  ;;  %v333_v42 = vpop.f32.mrb[1].mxu1 }
 0x13b   :  { %v2323_v43 = vpop.f32.mrb[2].mxu0  ;;  %v3134_v44 = vadd.f32 %v2167_v37, %v333_v42 }
 0x13c   :  { %v3136_v45 = vadd.f32 %v2323_v43, %v2158_v35  ;;  %v227_v46 = vpop.f32.mrb[3].mxu0 }
 0x13d   :  { %v3138_v47 = vadd.f32 %v2158_v35, %v227_v46  ;;  %v2343_v48 = vpop.f32.mrb[2].mxu1 }
 0x13e   :  { %v3140_v49 = vadd.f32 %v2343_v48, %v2167_v37  ;;  %v343_v50 = vpop.f32.mrb[3].mxu1 }
 0x13f   :  { %v2326_v51 = vpop.f32.mrb[4].mxu0  ;;  %v3142_v52 = vadd.f32 %v2167_v37, %v343_v50 }
 0x140   :  { %v3144_v53 = vadd.f32 %v2326_v51, %v2158_v35  ;;  %v237_v54 = vpop.f32.mrb[5].mxu0 }
 0x141   :  { %v3146_v55 = vadd.f32 %v2158_v35, %v237_v54  ;;  %v2346_v56 = vpop.f32.mrb[4].mxu1 }
 0x142   :  { %v3148_v57 = vadd.f32 %v2346_v56, %v2167_v37  ;;  %v353_v58 = vpop.f32.mrb[5].mxu1 }
 0x143   :  { %v2329_v59 = vpop.f32.mrb[6].mxu0  ;;  %v3150_v60 = vadd.f32 %v2167_v37, %v353_v58 }
 0x144   :  { %v3152_v61 = vadd.f32 %v2329_v59, %v2158_v35  ;;  %v247_v62 = vpop.f32.mrb[7].mxu0 }
 0x145   :  { %v3154_v63 = vadd.f32 %v2158_v35, %v247_v62  ;;  %v2349_v0 = vpop.f32.mrb[6].mxu1 }
 0x146   :  { %v369_v2 = vadd.f32 %v2349_v0, %v2167_v37  ;;  %v363_v3 = vpop.f32.mrb[7].mxu1 }
 0x147   :  { %v449_v4 = vpop.f32.mrb[8].mxu0  ;;  %v3156_v5 = vadd.f32 %v2167_v37, %v363_v3 }
 0x148   :  { %v453_v6 = vadd.f32 %v449_v4, %v218_v1  ;;  %v2360_v7 = vpop.f32.mrb[9].mxu0 }
 0x149   :  { %v556_v8 = vpop.f32.mrb[8].mxu1 }
 0x14a   :  { %2654 = vtanh.f32 %v453_v6  ;;  %v560_v9 = vadd.f32 %v556_v8, %v369_v2  ;;  %v2371_v10 = vpop.f32.mrb[9].mxu1  ;;  %v2176_v15 = vmul.f32 -1.442695, %v453_v6 }
 0x14c   :  { %2656 = vtanh.f32 %v560_v9  ;;  %v2177_v16 = vmul.f32 -1.442695, %v560_v9 }
 0x14d   :  { %2658 = vpow2.f32 %v2176_v15 }
 0x14e   :  { %2660 = vpow2.f32 %v2177_v16 }
 0x154   :  { %v2655_v11 = vpop.eup %2654 }
 0x155   :  { %463 = vrot.lane.b32.xlu0 %v2655_v11, %s2933_s24 }
 0x156   :  { %v2657_v13 = vpop.eup %2656 }
 0x157   :  { %v2659_v17 = vpop.eup %2658 }
 0x158   :  { %v457_v20 = vadd.f32 1.0, %v2659_v17  ;;  %v2661_v21 = vpop.eup %2660 }
 0x159   :  { %570 = vrot.lane.b32.xlu0 %v2657_v13, %s2933_s24  ;;  %v564_v22 = vadd.f32 1.0, %v2661_v21 }
 0x15a   :  { %2662 = vrcp.f32 %v457_v20 }
 0x15b   :  { %2664 = vrcp.f32 %v564_v22 }
 0x15d   :  { %480 = vperm.xlu0 %2652, %v478_v14  }
 0x164   :  { %v2663_v24 = vpop.eup %2662 }
 0x165   :  { %v2665_v28 = vpop.eup %2664  ;;  %v461_v35 = vmul.f32 0.0, %v2663_v24 }
 0x166   :  { %v568_v39 = vmul.f32 0.0, %v2665_v28 }
 0x1c7   :  { %v464_v25 = vpop.permute.xlu0 %463 }
 0x1c8   :  { %v466_v26 = vmul.f32 %v2663_v24, %v464_v25 }
 0x1ca   :  { %468 = vrot.lane.b32.xlu1 %v466_v26, %s2934_s1  ;;  %v809_v26 = vsel %vm378_vm7, 1, %v2932_v34 }
 0x1cb   :  { %v571_v30 = vpop.permute.xlu0 %570 }
 0x1cc   :  { %v573_v31 = vmul.f32 %v2665_v28, %v571_v30 }
 0x1ce   :  { %575 = vrot.lane.b32.xlu1 %v573_v31, %s2934_s1 }
 0x1d2   :  { %587 = vperm.xlu1 %2653, %v585_v32  }
 0x1dc   :  { %v3181_v50 = vpop.permute.xlu0 %480 }
 0x1dd   :  { %vm482_vm4 = vcmp.eq.s32.totalorder %v3181_v50, 1 }
 0x23c   :  { %v469_v36 = vpop.permute.xlu1 %468 }
 0x23d   :  { %v3171_v37 = vadd.f32 %v469_v36, %v461_v35 }
 0x23f   :  { %2666 = vtanh.f32 %v3171_v37 }
 0x240   :  { %v576_v40 = vpop.permute.xlu1 %575 }
 0x241   :  { %v3174_v42 = vadd.f32 %v576_v40, %v568_v39 }
 0x243   :  { %2668 = vtanh.f32 %v3174_v42 }
 0x249   :  { %v2667_v43 = vpop.eup %2666 }
 0x24a   :  { %474 = vrot.lane.b32.xlu1 %v2667_v43, %s2933_s24 }
 0x24d   :  { %v2669_v46 = vpop.eup %2668 }
 0x24e   :  { %581 = vrot.lane.b32.xlu0 %v2669_v46, %s2933_s24 }
 0x251   :  { %v3179_v48 = vpop.permute.xlu1 %587 }
 0x252   :  { %vm589_vm5 = vcmp.eq.s32.totalorder %v3179_v48, 1 }
 0x253   :  { %v3233_v35 = vsel %vm589_vm5, %v3174_v42, 0.0 }
 0x2bc   :  { %v475_v51 = vpop.permute.xlu1 %474 }
 0x2bd   :  { %v477_v54 = vmul.f32 %v2663_v24, %v475_v51  ;;  %v696_v24 = vsel %vm373_vm6, 1, %v2932_v34 }
 0x2bf   :  { %v3186_v56 = vsel %vm482_vm4, %v477_v54, 0.0 }
 0x2c0   :  { %v582_v58 = vpop.permute.xlu0 %581  ;;  %486 = vrot.lane.b32.xlu1 %v3186_v56, %s2934_s1 }
 0x2c1   :  { %v584_v59 = vmul.f32 %v2665_v28, %v582_v58  ;;  %v3225_v28 = vsel %vm482_vm4, %v3171_v37, 0.0 }
 0x2c3   :  { %v3193_v62 = vsel %vm589_vm5, %v584_v59, 0.0 }
 0x2c4   :  { %710 = vrot.lane.b32.xlu0 %v3193_v62, %s2934_s1 }
 0x332   :  { %v487_v0 = vpop.permute.xlu1 %486 }
 0x333   :  { %489 = vst.msk [vmem:[#allocation11] sm:$0xff] %vm126_vm0, %v487_v0  ;;  %2381 = vmatmul.mubr.msk.f32.vlgmr.msra.gmra.mrb[10].mxu0 %vm126_vm0, %v487_v0 }
 0x334   :  { %2568 = vmatpush3.bf16.msra.mxu0 %v3072_v18  ;;  %2402 = vmatprep.mubr.msk.f32.mxu0 %vm2930_vm1, %v2931_v33 }
 0x335   :  { %2569 = vmatprep.subr.bf16.mxu0 %v2929_v19 }
 0x336   :  { %v711_v1 = vpop.permute.xlu0 %710 }
 0x337   :  { %2392 = vmatmul.mubr.msk.f32.vlgmr.msra.gmra.mrb[10].mxu1 %vm126_vm0, %v711_v1 }
 0x338   :  { %2571 = vmatpush3.bf16.msra.mxu0 %v3081_v27  ;;  %2574 = vmatpush3.bf16.msra.mxu1 %v3076_v23 }
 0x339   :  { %2575 = vmatprep.subr.bf16.mxu1 %v2929_v19  ;;  %2413 = vmatprep.mubr.msk.f32.mxu1 %vm2930_vm1, %v2931_v33 }
 0x33a   :  { %2578 = vmatprep.subr.bf16.mxu0 %v2929_v19 }
 0x33c   :  { %2577 = vmatpush3.bf16.msra.mxu1 %v3087_v29 }
 0x33d   :  { %2584 = vmatprep.subr.bf16.mxu1 %v2929_v19 }
 0x406   :  { %v667_v2 = vpop.f32.mrb[10].mxu0 }
 0x407   :  { %v671_v3 = vadd.f32 %v667_v2, %v3130_v38  ;;  %v2382_v4 = vpop.f32.mrb[11].mxu0 }
 0x409   :  { %2670 = vtanh.f32 %v671_v3  ;;  %v2179_v11 = vmul.f32 -1.442695, %v671_v3 }
 0x40a   :  { %v780_v6 = vpop.f32.mrb[10].mxu1 }
 0x40b   :  { %v784_v7 = vadd.f32 %v780_v6, %v3156_v5  ;;  %v2393_v8 = vpop.f32.mrb[11].mxu1 }
 0x40d   :  { %2672 = vtanh.f32 %v784_v7  ;;  %v2181_v13 = vmul.f32 -1.442695, %v784_v7 }
 0x40e   :  { %2674 = vpow2.f32 %v2179_v11 }
 0x40f   :  { %2676 = vpow2.f32 %v2181_v13 }
 0x413   :  { %v2671_v9 = vpop.eup %2670 }
 0x414   :  { %681 = vrot.lane.b32.xlu1 %v2671_v9, %s2933_s24 }
 0x417   :  { %v2673_v10 = vpop.eup %2672 }
 0x418   :  { %794 = vrot.lane.b32.xlu0 %v2673_v10, %s2933_s24  ;;  %v2675_v14 = vpop.eup %2674 }
 0x419   :  { %v675_v15 = vadd.f32 1.0, %v2675_v14  ;;  %v2677_v38 = vpop.eup %2676 }
 0x41a   :  { %v788_v16 = vadd.f32 1.0, %v2677_v38 }
 0x41b   :  { %2678 = vrcp.f32 %v675_v15 }
 0x41c   :  { %2680 = vrcp.f32 %v788_v16 }
 0x425   :  { %v2679_v17 = vpop.eup %2678 }
 0x426   :  { %v2681_v21 = vpop.eup %2680  ;;  %v679_v30 = vmul.f32 %v2679_v17, %v3225_v28 }
 0x427   :  { %v792_v36 = vmul.f32 %v2681_v21, %v3233_v35 }
 0x486   :  { %v682_v5 = vpop.permute.xlu1 %681 }
 0x487   :  { %v684_v20 = vmul.f32 %v2679_v17, %v682_v5 }
 0x489   :  { %686 = vrot.lane.b32.xlu1 %v684_v20, %s2934_s1 }
 0x48a   :  { %v795_v22 = vpop.permute.xlu0 %794 }
 0x48b   :  { %v797_v25 = vmul.f32 %v2681_v21, %v795_v22  ;;  %v923_v22 = vsel %vm374_vm10, 1, %v2932_v34 }
 0x48d   :  { %799 = vrot.lane.b32.xlu0 %v797_v25, %s2934_s1  ;;  %698 = vperm.xlu1 %2653, %v696_v24   ;;  %v1037_v25 = vsel %vm377_vm11, 1, %v2932_v34 }
 0x491   :  { %811 = vperm.xlu0 %2652, %v809_v26  }
 0x4fb   :  { %v687_v31 = vpop.permute.xlu1 %686 }
 0x4fc   :  { %v3228_v32 = vadd.f32 %v687_v31, %v679_v30 }
 0x4fe   :  { %2682 = vtanh.f32 %v3228_v32 }
 0x4ff   :  { %v800_v39 = vpop.permute.xlu0 %799 }
 0x500   :  { %v3237_v40 = vadd.f32 %v800_v39, %v792_v36 }
 0x502   :  { %2684 = vtanh.f32 %v3237_v40 }
 0x508   :  { %v2683_v37 = vpop.eup %2682 }
 0x509   :  { %692 = vrot.lane.b32.xlu1 %v2683_v37, %s2933_s24 }
 0x50c   :  { %v2685_v43 = vpop.eup %2684  ;;  %v3242_v46 = vpop.permute.xlu1 %698 }
 0x50d   :  { %805 = vrot.lane.b32.xlu0 %v2685_v43, %s2933_s24  ;;  %vm700_vm8 = vcmp.eq.s32.totalorder %v3242_v46, 1 }
 0x50e   :  { %v3296_v26 = vsel %vm700_vm8, %v3228_v32, %v3225_v28 }
 0x510   :  { %v3244_v51 = vpop.permute.xlu0 %811 }
 0x511   :  { %vm813_vm9 = vcmp.eq.s32.totalorder %v3244_v51, 1 }
 0x512   :  { %v3305_v39 = vsel %vm813_vm9, %v3237_v40, %v3233_v35 }
 0x57b   :  { %v693_v42 = vpop.permute.xlu1 %692 }
 0x57c   :  { %v3246_v54 = vmul.f32 %v2679_v17, %v693_v42 }
 0x57e   :  { %v3253_v58 = vsel %vm700_vm8, %v3246_v54, %v3186_v56 }
 0x57f   :  { %v806_v59 = vpop.permute.xlu0 %805  ;;  %824 = vrot.lane.b32.xlu1 %v3253_v58, %s2934_s1 }
 0x580   :  { %v3257_v0 = vmul.f32 %v2681_v21, %v806_v59 }
 0x582   :  { %v3264_v1 = vsel %vm813_vm9, %v3257_v0, %v3193_v62 }
 0x583   :  { %938 = vrot.lane.b32.xlu0 %v3264_v1, %s2934_s1 }
 0x5f1   :  { %v825_v2 = vpop.permute.xlu1 %824 }
 0x5f2   :  { %2403 = vmatmul.mubr.msk.f32.vlgmr.msra.gmra.mrb[12].mxu0 %vm126_vm0, %v825_v2 }
 0x5f3   :  { %2580 = vmatpush3.bf16.msra.mxu0 %v3072_v18  ;;  %2424 = vmatprep.mubr.msk.f32.mxu0 %vm2930_vm1, %v2931_v33 }
 0x5f4   :  { %2581 = vmatprep.subr.bf16.mxu0 %v2929_v19 }
 0x5f5   :  { %v939_v56 = vpop.permute.xlu0 %938 }
 0x5f6   :  { %2414 = vmatmul.mubr.msk.f32.vlgmr.msra.gmra.mrb[12].mxu1 %vm126_vm0, %v939_v56 }
 0x5f7   :  { %2583 = vmatpush3.bf16.msra.mxu0 %v3081_v27  ;;  %2586 = vmatpush3.bf16.msra.mxu1 %v3076_v23 }
 0x5f8   :  { %2587 = vmatprep.subr.bf16.mxu1 %v2929_v19  ;;  %2435 = vmatprep.mubr.msk.f32.mxu1 %vm2930_vm1, %v2931_v33 }
 0x5f9   :  { %2590 = vmatprep.subr.bf16.mxu0 %v2929_v19 }
 0x5fb   :  { %2589 = vmatpush3.bf16.msra.mxu1 %v3087_v29 }
 0x5fc   :  { %2596 = vmatprep.subr.bf16.mxu1 %v2929_v19 }
 0x6c5   :  { %v894_v3 = vpop.f32.mrb[12].mxu0 }
 0x6c6   :  { %v898_v4 = vadd.f32 %v894_v3, %v3138_v47  ;;  %v2404_v6 = vpop.f32.mrb[13].mxu0 }
 0x6c8   :  { %2686 = vtanh.f32 %v898_v4  ;;  %v2183_v13 = vmul.f32 -1.442695, %v898_v4 }
 0x6c9   :  { %v1008_v7 = vpop.f32.mrb[12].mxu1 }
 0x6ca   :  { %v1012_v8 = vadd.f32 %v1008_v7, %v3148_v57  ;;  %v2415_v9 = vpop.f32.mrb[13].mxu1 }
 0x6cc   :  { %2688 = vtanh.f32 %v1012_v8  ;;  %v2185_v14 = vmul.f32 -1.442695, %v1012_v8 }
 0x6cd   :  { %2690 = vpow2.f32 %v2183_v13 }
 0x6ce   :  { %2692 = vpow2.f32 %v2185_v14 }
 0x6d2   :  { %v2687_v10 = vpop.eup %2686 }
 0x6d3   :  { %908 = vrot.lane.b32.xlu1 %v2687_v10, %s2933_s24 }
 0x6d6   :  { %v2689_v11 = vpop.eup %2688 }
 0x6d7   :  { %1022 = vrot.lane.b32.xlu0 %v2689_v11, %s2933_s24  ;;  %v2691_v15 = vpop.eup %2690 }
 0x6d8   :  { %v902_v38 = vadd.f32 1.0, %v2691_v15  ;;  %v2693_v47 = vpop.eup %2692 }
 0x6d9   :  { %v1016_v16 = vadd.f32 1.0, %v2693_v47 }
 0x6da   :  { %2694 = vrcp.f32 %v902_v38 }
 0x6db   :  { %2696 = vrcp.f32 %v1016_v16 }
 0x6e4   :  { %v2695_v17 = vpop.eup %2694 }
 0x6e5   :  { %v2697_v20 = vpop.eup %2696  ;;  %v906_v30 = vmul.f32 %v2695_v17, %v3296_v26 }
 0x6e6   :  { %v1020_v37 = vmul.f32 %v2697_v20, %v3305_v39 }
 0x745   :  { %v909_v57 = vpop.permute.xlu1 %908 }
 0x746   :  { %v911_v5 = vmul.f32 %v2695_v17, %v909_v57 }
 0x748   :  { %913 = vrot.lane.b32.xlu1 %v911_v5, %s2934_s1 }
 0x749   :  { %v1023_v21 = vpop.permute.xlu0 %1022 }
 0x74a   :  { %v1025_v24 = vmul.f32 %v2697_v20, %v1023_v21 }
 0x74c   :  { %1027 = vrot.lane.b32.xlu0 %v1025_v24, %s2934_s1  ;;  %925 = vperm.xlu1 %2653, %v923_v22   ;;  %v1151_v24 = vsel %vm375_vm14, 1, %v2932_v34 }
 0x750   :  { %1039 = vperm.xlu0 %2652, %v1037_v25  }
 0x7ba   :  { %v914_v31 = vpop.permute.xlu1 %913 }
 0x7bb   :  { %v3299_v36 = vadd.f32 %v914_v31, %v906_v30  ;;  %v1265_v30 = vsel %vm376_vm15, 1, %v2932_v34 }
 0x7bd   :  { %2698 = vtanh.f32 %v3299_v36 }
 0x7be   :  { %v1028_v43 = vpop.permute.xlu0 %1027 }
 0x7bf   :  { %v3309_v42 = vadd.f32 %v1028_v43, %v1020_v37 }
 0x7c1   :  { %2700 = vtanh.f32 %v3309_v42 }
 0x7c7   :  { %v2699_v28 = vpop.eup %2698 }
 0x7c8   :  { %919 = vrot.lane.b32.xlu1 %v2699_v28, %s2933_s24 }
 0x7cb   :  { %v2701_v32 = vpop.eup %2700  ;;  %v3314_v59 = vpop.permute.xlu1 %925 }
 0x7cc   :  { %1033 = vrot.lane.b32.xlu0 %v2701_v32, %s2933_s24  ;;  %vm927_vm12 = vcmp.eq.s32.totalorder %v3314_v59, 1 }
 0x7cd   :  { %v3368_v31 = vsel %vm927_vm12, %v3299_v36, %v3296_v26 }
 0x7cf   :  { %v3316_v2 = vpop.permute.xlu0 %1039 }
 0x7d0   :  { %vm1041_vm13 = vcmp.eq.s32.totalorder %v3316_v2, 1 }
 0x7d1   :  { %v3377_v12 = vsel %vm1041_vm13, %v3309_v42, %v3305_v39 }
 0x83a   :  { %v920_v35 = vpop.permute.xlu1 %919 }
 0x83b   :  { %v3318_v40 = vmul.f32 %v2695_v17, %v920_v35 }
 0x83d   :  { %v3325_v56 = vsel %vm927_vm12, %v3318_v40, %v3253_v58 }
 0x83e   :  { %v1034_v3 = vpop.permute.xlu0 %1033  ;;  %1052 = vrot.lane.b32.xlu1 %v3325_v56, %s2934_s1 }
 0x83f   :  { %v3329_v4 = vmul.f32 %v2697_v20, %v1034_v3 }
 0x841   :  { %v3336_v6 = vsel %vm1041_vm13, %v3329_v4, %v3264_v1 }
 0x842   :  { %1166 = vrot.lane.b32.xlu0 %v3336_v6, %s2934_s1 }
 0x8b0   :  { %v1053_v7 = vpop.permute.xlu1 %1052 }
 0x8b1   :  { %2425 = vmatmul.mubr.msk.f32.vlgmr.msra.gmra.mrb[14].mxu0 %vm126_vm0, %v1053_v7 }
 0x8b2   :  { %2592 = vmatpush3.bf16.msra.mxu0 %v3072_v18  ;;  %2446 = vmatprep.mubr.msk.f32.mxu0 %vm2930_vm1, %v2931_v33 }
 0x8b3   :  { %2593 = vmatprep.subr.bf16.mxu0 %v2929_v19 }
 0x8b4   :  { %v1167_v58 = vpop.permute.xlu0 %1166 }
 0x8b5   :  { %2436 = vmatmul.mubr.msk.f32.vlgmr.msra.gmra.mrb[14].mxu1 %vm126_vm0, %v1167_v58 }
 0x8b6   :  { %2595 = vmatpush3.bf16.msra.mxu0 %v3081_v27  ;;  %2598 = vmatpush3.bf16.msra.mxu1 %v3076_v23 }
 0x8b7   :  { %2599 = vmatprep.subr.bf16.mxu1 %v2929_v19  ;;  %2457 = vmatprep.mubr.msk.f32.mxu1 %vm2930_vm1, %v2931_v33 }
 0x8b8   :  { %2602 = vmatprep.subr.bf16.mxu0 %v2929_v19 }
 0x8ba   :  { %2601 = vmatpush3.bf16.msra.mxu1 %v3087_v29 }
 0x8bb   :  { %2608 = vmatprep.subr.bf16.mxu1 %v2929_v19 }
 0x984   :  { %v1122_v1 = vpop.f32.mrb[14].mxu0 }
 0x985   :  { %v1126_v8 = vadd.f32 %v1122_v1, %v3136_v45  ;;  %v2426_v9 = vpop.f32.mrb[15].mxu0 }
 0x987   :  { %2702 = vtanh.f32 %v1126_v8  ;;  %v2187_v38 = vmul.f32 -1.442695, %v1126_v8 }
 0x988   :  { %v1236_v10 = vpop.f32.mrb[14].mxu1 }
 0x989   :  { %v1240_v11 = vadd.f32 %v1236_v10, %v3150_v60  ;;  %v2437_v13 = vpop.f32.mrb[15].mxu1 }
 0x98b   :  { %2704 = vtanh.f32 %v1240_v11  ;;  %v2189_v47 = vmul.f32 -1.442695, %v1240_v11 }
 0x98c   :  { %2706 = vpow2.f32 %v2187_v38 }
 0x98d   :  { %2708 = vpow2.f32 %v2189_v47 }
 0x991   :  { %v2703_v14 = vpop.eup %2702 }
 0x992   :  { %1136 = vrot.lane.b32.xlu1 %v2703_v14, %s2933_s24 }
 0x995   :  { %v2705_v15 = vpop.eup %2704 }
 0x996   :  { %1250 = vrot.lane.b32.xlu0 %v2705_v15, %s2933_s24  ;;  %v2707_v16 = vpop.eup %2706 }
 0x997   :  { %v1130_v17 = vadd.f32 1.0, %v2707_v16  ;;  %v2709_v45 = vpop.eup %2708 }
 0x998   :  { %v1244_v57 = vadd.f32 1.0, %v2709_v45 }
 0x999   :  { %2710 = vrcp.f32 %v1130_v17 }
 0x99a   :  { %2712 = vrcp.f32 %v1244_v57 }
 0x9a3   :  { %v2711_v5 = vpop.eup %2710 }
 0x9a4   :  { %v2713_v21 = vpop.eup %2712  ;;  %v1134_v37 = vmul.f32 %v2711_v5, %v3368_v31 }
 0x9a5   :  { %v1248_v34 = vmul.f32 %v2713_v21, %v3377_v12 }
 0xa04   :  { %v1137_v60 = vpop.permute.xlu1 %1136 }
 0xa05   :  { %v1139_v20 = vmul.f32 %v2711_v5, %v1137_v60 }
 0xa07   :  { %1141 = vrot.lane.b32.xlu1 %v1139_v20, %s2934_s1 }
 0xa08   :  { %v1251_v22 = vpop.permute.xlu0 %1250 }
 0xa09   :  { %v1253_v25 = vmul.f32 %v2713_v21, %v1251_v22 }
 0xa0b   :  { %1255 = vrot.lane.b32.xlu0 %v1253_v25, %s2934_s1  ;;  %1153 = vperm.xlu1 %2653, %v1151_v24  }
 0xa0f   :  { %1267 = vperm.xlu0 %2652, %v1265_v30  }
 0xa79   :  { %v1142_v43 = vpop.permute.xlu1 %1141 }
 0xa7a   :  { %v3371_v28 = vadd.f32 %v1142_v43, %v1134_v37 }
 0xa7c   :  { %2714 = vtanh.f32 %v3371_v28 }
 0xa7d   :  { %v1256_v32 = vpop.permute.xlu0 %1255 }
 0xa7e   :  { %v3381_v35 = vadd.f32 %v1256_v32, %v1248_v34 }
 0xa80   :  { %2716 = vtanh.f32 %v3381_v35 }
 0xa86   :  { %v2715_v26 = vpop.eup %2714 }
 0xa87   :  { %1147 = vrot.lane.b32.xlu1 %v2715_v26, %s2933_s24 }
 0xa8a   :  { %v2717_v36 = vpop.eup %2716  ;;  %v3386_v3 = vpop.permute.xlu1 %1153 }
 0xa8b   :  { %1261 = vrot.lane.b32.xlu0 %v2717_v36, %s2933_s24  ;;  %vm1155_vm2 = vcmp.eq.s32.totalorder %v3386_v3, 1 }
 0xa8c   :  { %v3436_v30 = vsel %vm1155_vm2, %v3371_v28, %v3368_v31 }
 0xa8e   :  { %v3388_v7 = vpop.permute.xlu0 %1267 }
 0xa8f   :  { %vm1269_vm3 = vcmp.eq.s32.totalorder %v3388_v7, 1 }
 0xa90   :  { %v3445_v32 = vsel %vm1269_vm3, %v3381_v35, %v3377_v12 }
 0xaf9   :  { %v1148_v39 = vpop.permute.xlu1 %1147 }
 0xafa   :  { %v3390_v42 = vmul.f32 %v2711_v5, %v1148_v39 }
 0xafc   :  { %v3397_v58 = vsel %vm1155_vm2, %v3390_v42, %v3325_v56 }
 0xafd   :  { %v1262_v1 = vpop.permute.xlu0 %1261  ;;  %1280 = vrot.lane.b32.xlu1 %v3397_v58, %s2934_s1 }
 0xafe   :  { %v3401_v8 = vmul.f32 %v2713_v21, %v1262_v1 }
 0xb00   :  { %v3408_v9 = vsel %vm1269_vm3, %v3401_v8, %v3336_v6 }
 0xb01   :  { %1388 = vrot.lane.b32.xlu0 %v3408_v9, %s2934_s1 }
 0xb6f   :  { %v1281_v10 = vpop.permute.xlu1 %1280 }
 0xb70   :  { %2447 = vmatmul.mubr.msk.f32.vlgmr.msra.gmra.mrb[16].mxu0 %vm126_vm0, %v1281_v10 }
 0xb71   :  { %2604 = vmatpush3.bf16.msra.mxu0 %v3072_v18  ;;  %2468 = vmatprep.mubr.msk.f32.mxu0 %vm2930_vm1, %v2931_v33 }
 0xb72   :  { %2605 = vmatprep.subr.bf16.mxu0 %v2929_v19 }
 0xb73   :  { %v1389_v56 = vpop.permute.xlu0 %1388 }
 0xb74   :  { %2458 = vmatmul.mubr.msk.f32.vlgmr.msra.gmra.mrb[16].mxu1 %vm126_vm0, %v1389_v56 }
 0xb75   :  { %2607 = vmatpush3.bf16.msra.mxu0 %v3081_v27  ;;  %2610 = vmatpush3.bf16.msra.mxu1 %v3076_v23 }
 0xb76   :  { %2611 = vmatprep.subr.bf16.mxu1 %v2929_v19  ;;  %2479 = vmatprep.mubr.msk.f32.mxu1 %vm2930_vm1, %v2931_v33 }
 0xb77   :  { %2614 = vmatprep.subr.bf16.mxu0 %v2929_v19 }
 0xb79   :  { %2613 = vmatpush3.bf16.msra.mxu1 %v3087_v29 }
 0xb7a   :  { %2620 = vmatprep.subr.bf16.mxu1 %v2929_v19 }
 0xc43   :  { %v1350_v6 = vpop.f32.mrb[16].mxu0 }
 0xc44   :  { %v1354_v11 = vadd.f32 %v1350_v6, %v3146_v55  ;;  %v2448_v13 = vpop.f32.mrb[17].mxu0 }
 0xc46   :  { %2718 = vtanh.f32 %v1354_v11  ;;  %v2191_v17 = vmul.f32 -1.442695, %v1354_v11 }
 0xc47   :  { %v1458_v14 = vpop.f32.mrb[16].mxu1 }
 0xc48   :  { %v1462_v15 = vadd.f32 %v1458_v14, %v3140_v49  ;;  %v2459_v38 = vpop.f32.mrb[17].mxu1 }
 0xc4a   :  { %2720 = vtanh.f32 %v1462_v15  ;;  %v2193_v45 = vmul.f32 -1.442695, %v1462_v15 }
 0xc4b   :  { %2722 = vpow2.f32 %v2191_v17 }
 0xc4c   :  { %2724 = vpow2.f32 %v2193_v45 }
 0xc50   :  { %v2719_v47 = vpop.eup %2718 }
 0xc51   :  { %1364 = vrot.lane.b32.xlu1 %v2719_v47, %s2933_s24 }
 0xc54   :  { %v2721_v16 = vpop.eup %2720 }
 0xc55   :  { %1472 = vrot.lane.b32.xlu0 %v2721_v16, %s2933_s24  ;;  %v2723_v57 = vpop.eup %2722 }
 0xc56   :  { %v1358_v5 = vadd.f32 1.0, %v2723_v57  ;;  %v2725_v55 = vpop.eup %2724 }
 0xc57   :  { %v1466_v60 = vadd.f32 1.0, %v2725_v55 }
 0xc58   :  { %2726 = vrcp.f32 %v1358_v5 }
 0xc59   :  { %2728 = vrcp.f32 %v1466_v60 }
 0xc62   :  { %v2727_v20 = vpop.eup %2726 }
 0xc63   :  { %v2729_v22 = vpop.eup %2728  ;;  %v1362_v37 = vmul.f32 %v2727_v20, %v3436_v30 }
 0xc64   :  { %v1470_v26 = vmul.f32 %v2729_v22, %v3445_v32 }
 0xcc3   :  { %v1365_v49 = vpop.permute.xlu1 %1364 }
 0xcc4   :  { %v1367_v21 = vmul.f32 %v2727_v20, %v1365_v49 }
 0xcc6   :  { %1369 = vrot.lane.b32.xlu1 %v1367_v21, %s2934_s1 }
 0xcc7   :  { %v1473_v24 = vpop.permute.xlu0 %1472 }
 0xcc8   :  { %v1475_v25 = vmul.f32 %v2729_v22, %v1473_v24 }
 0xcca   :  { %1477 = vrot.lane.b32.xlu0 %v1475_v25, %s2934_s1 }
 0xd38   :  { %v1370_v43 = vpop.permute.xlu1 %1369 }
 0xd39   :  { %v3439_v34 = vadd.f32 %v1370_v43, %v1362_v37 }
 0xd3b   :  { %2730 = vtanh.f32 %v3439_v34  ;;  %v3498_v25 = vsel %vm1269_vm3, %v3439_v34, %v3436_v30 }
 0xd3c   :  { %v1478_v36 = vpop.permute.xlu0 %1477 }
 0xd3d   :  { %v3449_v39 = vadd.f32 %v1478_v36, %v1470_v26 }
 0xd3f   :  { %2732 = vtanh.f32 %v3449_v39  ;;  %v3505_v36 = vsel %vm1155_vm2, %v3449_v39, %v3445_v32 }
 0xd45   :  { %v2731_v31 = vpop.eup %2730 }
 0xd46   :  { %1375 = vrot.lane.b32.xlu1 %v2731_v31, %s2933_s24 }
 0xd49   :  { %v2733_v28 = vpop.eup %2732 }
 0xd4a   :  { %1483 = vrot.lane.b32.xlu0 %v2733_v28, %s2933_s24 }
 0xdb8   :  { %v1376_v1 = vpop.permute.xlu1 %1375 }
 0xdb9   :  { %v3454_v10 = vmul.f32 %v2727_v20, %v1376_v1 }
 0xdbb   :  { %v3460_v12 = vsel %vm1269_vm3, %v3454_v10, %v3397_v58 }
 0xdbc   :  { %v1484_v35 = vpop.permute.xlu0 %1483  ;;  %1496 = vrot.lane.b32.xlu1 %v3460_v12, %s2934_s1 }
 0xdbd   :  { %v3464_v56 = vmul.f32 %v2729_v22, %v1484_v35 }
 0xdbf   :  { %v3470_v6 = vsel %vm1155_vm2, %v3464_v56, %v3408_v9 }
 0xdc0   :  { %1604 = vrot.lane.b32.xlu0 %v3470_v6, %s2934_s1 }
 0xe2e   :  { %v1497_v11 = vpop.permute.xlu1 %1496 }
 0xe2f   :  { %2469 = vmatmul.mubr.msk.f32.vlgmr.msra.gmra.mrb[18].mxu0 %vm126_vm0, %v1497_v11 }
 0xe30   :  { %2616 = vmatpush3.bf16.msra.mxu0 %v3072_v18  ;;  %2490 = vmatprep.mubr.msk.f32.mxu0 %vm2930_vm1, %v2931_v33 }
 0xe31   :  { %2617 = vmatprep.subr.bf16.mxu0 %v2929_v19 }
 0xe32   :  { %v1605_v58 = vpop.permute.xlu0 %1604 }
 0xe33   :  { %2480 = vmatmul.mubr.msk.f32.vlgmr.msra.gmra.mrb[18].mxu1 %vm126_vm0, %v1605_v58 }
 0xe34   :  { %2619 = vmatpush3.bf16.msra.mxu0 %v3081_v27  ;;  %2622 = vmatpush3.bf16.msra.mxu1 %v3076_v23 }
 0xe35   :  { %2623 = vmatprep.subr.bf16.mxu1 %v2929_v19  ;;  %2501 = vmatprep.mubr.msk.f32.mxu1 %vm2930_vm1, %v2931_v33 }
 0xe36   :  { %2626 = vmatprep.subr.bf16.mxu0 %v2929_v19 }
 0xe38   :  { %2625 = vmatpush3.bf16.msra.mxu1 %v3087_v29 }
 0xe39   :  { %2632 = vmatprep.subr.bf16.mxu1 %v2929_v19 }
 0xf02   :  { %v1566_v9 = vpop.f32.mrb[18].mxu0 }
 0xf03   :  { %v1570_v13 = vadd.f32 %v1566_v9, %v3144_v53  ;;  %v2470_v14 = vpop.f32.mrb[19].mxu0 }
 0xf05   :  { %2734 = vtanh.f32 %v1570_v13  ;;  %v2195_v45 = vmul.f32 -1.442695, %v1570_v13 }
 0xf06   :  { %v1674_v15 = vpop.f32.mrb[18].mxu1 }
 0xf07   :  { %v1678_v38 = vadd.f32 %v1674_v15, %v3142_v52  ;;  %v2481_v47 = vpop.f32.mrb[19].mxu1 }
 0xf09   :  { %2736 = vtanh.f32 %v1678_v38  ;;  %v2197_v57 = vmul.f32 -1.442695, %v1678_v38 }
 0xf0a   :  { %2738 = vpow2.f32 %v2195_v45 }
 0xf0b   :  { %2740 = vpow2.f32 %v2197_v57 }
 0xf0f   :  { %v2735_v16 = vpop.eup %2734 }
 0xf10   :  { %1580 = vrot.lane.b32.xlu1 %v2735_v16, %s2933_s24 }
 0xf13   :  { %v2737_v17 = vpop.eup %2736 }
 0xf14   :  { %1688 = vrot.lane.b32.xlu0 %v2737_v17, %s2933_s24  ;;  %v2739_v5 = vpop.eup %2738 }
 0xf15   :  { %v1574_v55 = vadd.f32 1.0, %v2739_v5  ;;  %v2741_v53 = vpop.eup %2740 }
 0xf16   :  { %v1682_v60 = vadd.f32 1.0, %v2741_v53 }
 0xf17   :  { %2742 = vrcp.f32 %v1574_v55 }
 0xf18   :  { %2744 = vrcp.f32 %v1682_v60 }
 0xf21   :  { %v2743_v20 = vpop.eup %2742 }
 0xf22   :  { %v2745_v21 = vpop.eup %2744  ;;  %v1578_v37 = vmul.f32 %v2743_v20, %v3498_v25 }
 0xf23   :  { %v1686_v31 = vmul.f32 %v2745_v21, %v3505_v36 }
 0xf82   :  { %v1581_v52 = vpop.permute.xlu1 %1580 }
 0xf83   :  { %v1583_v49 = vmul.f32 %v2743_v20, %v1581_v52 }
 0xf85   :  { %1585 = vrot.lane.b32.xlu1 %v1583_v49, %s2934_s1 }
 0xf86   :  { %v1689_v22 = vpop.permute.xlu0 %1688 }
 0xf87   :  { %v1691_v24 = vmul.f32 %v2745_v21, %v1689_v22 }
 0xf89   :  { %1693 = vrot.lane.b32.xlu0 %v1691_v24, %s2934_s1 }
 0xff7   :  { %v1586_v43 = vpop.permute.xlu1 %1585 }
 0xff8   :  { %v1588_v26 = vadd.f32 %v1586_v43, %v1578_v37 }
 0xffa   :  { %2746 = vtanh.f32 %v1588_v26  ;;  %v1596_v60 = vsel %vm1041_vm13, %v1588_v26, %v3498_v25 }
 0xffb   :  { %v1694_v28 = vpop.permute.xlu0 %1693 }
 0xffc   :  { %v1696_v1 = vadd.f32 %v1694_v28, %v1686_v31 }
 0xffe   :  { %2748 = vtanh.f32 %v1696_v1 }
0x1004   :  { %v2747_v35 = vpop.eup %2746 }
0x1005   :  { %1591 = vrot.lane.b32.xlu1 %v2747_v35, %s2933_s24 }
0x1008   :  { %v2749_v30 = vpop.eup %2748 }
0x1009   :  { %1699 = vrot.lane.b32.xlu0 %v2749_v30, %s2933_s24 }
0x1077   :  { %v1592_v34 = vpop.permute.xlu1 %1591 }
0x1078   :  { %v3510_v11 = vmul.f32 %v2743_v20, %v1592_v34 }
0x107a   :  { %v3516_v32 = vsel %vm1041_vm13, %v3510_v11, %v3460_v12 }
0x107b   :  { %v1700_v39 = vpop.permute.xlu0 %1699  ;;  %1712 = vrot.lane.b32.xlu1 %v3516_v32, %s2934_s1 }
0x107c   :  { %v3520_v58 = vmul.f32 %v2745_v21, %v1700_v39  ;;  %v1704_v21 = vsel %vm927_vm12, %v1696_v1, %v3505_v36 }
0x107e   :  { %v3526_v9 = vsel %vm927_vm12, %v3520_v58, %v3470_v6 }
0x107f   :  { %1820 = vrot.lane.b32.xlu0 %v3526_v9, %s2934_s1 }
0x10ed   :  { %v1713_v13 = vpop.permute.xlu1 %1712 }
0x10ee   :  { %2491 = vmatmul.mubr.msk.f32.vlgmr.msra.gmra.mrb[20].mxu0 %vm126_vm0, %v1713_v13 }
0x10ef   :  { %2628 = vmatpush3.bf16.msra.mxu0 %v3072_v18  ;;  %2512 = vmatprep.mubr.msk.f32.mxu0 %vm2930_vm1, %v2931_v33 }
0x10f0   :  { %2629 = vmatprep.subr.bf16.mxu0 %v2929_v19 }
0x10f1   :  { %v1821_v12 = vpop.permute.xlu0 %1820 }
0x10f2   :  { %2502 = vmatmul.mubr.msk.f32.vlgmr.msra.gmra.mrb[20].mxu1 %vm126_vm0, %v1821_v12 }
0x10f3   :  { %2631 = vmatpush3.bf16.msra.mxu0 %v3081_v27  ;;  %2634 = vmatpush3.bf16.msra.mxu1 %v3076_v23 }
0x10f4   :  { %2635 = vmatprep.subr.bf16.mxu1 %v2929_v19  ;;  %2523 = vmatprep.mubr.msk.f32.mxu1 %vm2930_vm1, %v2931_v33  ;;  %vm597_vm1 = vcmask 523520  }
0x10f7   :  { %2637 = vmatpush3.bf16.msra.mxu1 %v3087_v29 }
0x11c1   :  { %v1782_v18 = vpop.f32.mrb[20].mxu0 }
0x11c2   :  { %v1786_v6 = vadd.f32 %v1782_v18, %v3154_v63  ;;  %v2492_v14 = vpop.f32.mrb[21].mxu0 }
0x11c4   :  { %2750 = vtanh.f32 %v1786_v6  ;;  %v2199_v19 = vmul.f32 -1.442695, %v1786_v6 }
0x11c5   :  { %v1890_v15 = vpop.f32.mrb[20].mxu1 }
0x11c6   :  { %v1894_v38 = vadd.f32 %v1890_v15, %v3132_v41  ;;  %v2503_v47 = vpop.f32.mrb[21].mxu1 }
0x11c8   :  { %2752 = vtanh.f32 %v1894_v38  ;;  %v2201_v33 = vmul.f32 -1.442695, %v1894_v38 }
0x11c9   :  { %2754 = vpow2.f32 %v2199_v19 }
0x11ca   :  { %2756 = vpow2.f32 %v2201_v33 }
0x11ce   :  { %v2751_v27 = vpop.eup %2750 }
0x11cf   :  { %1796 = vrot.lane.b32.xlu1 %v2751_v27, %s2933_s24 }
0x11d2   :  { %v2753_v23 = vpop.eup %2752 }
0x11d3   :  { %1904 = vrot.lane.b32.xlu0 %v2753_v23, %s2933_s24  ;;  %v2755_v29 = vpop.eup %2754 }
0x11d4   :  { %v1790_v16 = vadd.f32 1.0, %v2755_v29  ;;  %v2757_v63 = vpop.eup %2756 }
0x11d5   :  { %v1898_v17 = vadd.f32 1.0, %v2757_v63 }
0x11d6   :  { %2758 = vrcp.f32 %v1790_v16 }
0x11d7   :  { %2760 = vrcp.f32 %v1898_v17 }
0x11e0   :  { %v2759_v45 = vpop.eup %2758 }
0x11e1   :  { %v2761_v5 = vpop.eup %2760  ;;  %v1794_v20 = vmul.f32 %v2759_v45, %v1596_v60 }
0x11e2   :  { %v1902_v22 = vmul.f32 %v2761_v5, %v1704_v21 }
0x1241   :  { %v1797_v41 = vpop.permute.xlu1 %1796 }
0x1242   :  { %v1799_v57 = vmul.f32 %v2759_v45, %v1797_v41 }
0x1244   :  { %1801 = vrot.lane.b32.xlu1 %v1799_v57, %s2934_s1 }
0x1245   :  { %v1905_v55 = vpop.permute.xlu0 %1904 }
0x1246   :  { %v1907_v53 = vmul.f32 %v2761_v5, %v1905_v55 }
0x1248   :  { %1909 = vrot.lane.b32.xlu0 %v1907_v53, %s2934_s1 }
0x12b6   :  { %v1802_v52 = vpop.permute.xlu1 %1801 }
0x12b7   :  { %v1804_v49 = vadd.f32 %v1802_v52, %v1794_v20 }
0x12b9   :  { %2762 = vtanh.f32 %v1804_v49  ;;  %v1812_v17 = vsel %vm813_vm9, %v1804_v49, %v1596_v60  ;;  %v703_v60 = vsel %vm700_vm8, %v3246_v54, 0.0  ;;  %v816_v49 = vsel %vm813_vm9, %v3257_v0, 0.0 }
0x12ba   :  { %v1910_v24 = vpop.permute.xlu0 %1909  ;;  %v1158_v54 = vsel %vm1155_vm2, %v3390_v42, 0.0  ;;  %v1272_v0 = vsel %vm1269_vm3, %v3401_v8, 0.0  ;;  %v1597_v42 = vsel %vm1041_vm13, %v3510_v11, 0.0  ;;  %v1705_v8 = vsel %vm927_vm12, %v3520_v58, 0.0 }
0x12bb   :  { %v1912_v37 = vadd.f32 %v1910_v24, %v1902_v22 }
0x12bd   :  { %2764 = vtanh.f32 %v1912_v37 }
0x12c3   :  { %v2763_v43 = vpop.eup %2762 }
0x12c4   :  { %1807 = vrot.lane.b32.xlu1 %v2763_v43, %s2933_s24 }
0x12c7   :  { %v2765_v31 = vpop.eup %2764 }
0x12c8   :  { %1915 = vrot.lane.b32.xlu0 %v2765_v31, %s2933_s24 }
0x1336   :  { %v1808_v28 = vpop.permute.xlu1 %1807 }
0x1337   :  { %v3556_v25 = vmul.f32 %v2759_v45, %v1808_v28 }
0x1339   :  { %v1811_v26 = vsel %vm813_vm9, %v3556_v25, %v3516_v32  ;;  %v1813_v3 = vsel %vm813_vm9, %v3556_v25, 0.0 }
0x133a   :  { %v1916_v36 = vpop.permute.xlu0 %1915  ;;  %1928 = vrot.lane.b32.xlu1 %v1811_v26, %s2934_s1 }
0x133b   :  { %v3563_v1 = vmul.f32 %v2761_v5, %v1916_v36  ;;  %v1920_v5 = vsel %vm700_vm8, %v1912_v37, %v1704_v21  ;;  %v930_v21 = vsel %vm927_vm12, %v3318_v40, 0.0  ;;  %v1381_v40 = vsel %vm1269_vm3, %v3454_v10, 0.0 }
0x133d   :  { %v1919_v35 = vsel %vm700_vm8, %v3563_v1, %v3526_v9  ;;  %v1921_v7 = vsel %vm700_vm8, %v3563_v1, 0.0 }
0x133e   :  { %2034 = vrot.lane.b32.xlu0 %v1919_v35, %s2934_s1 }
0x13ac   :  { %v1929_v30 = vpop.permute.xlu1 %1928 }
0x13ad   :  { %2513 = vmatmul.mubr.msk.f32.vlgmr.msra.gmra.mrb[22].mxu0 %vm126_vm0, %v1929_v30 }
0x13b0   :  { %v2035_v34 = vpop.permute.xlu0 %2034 }
0x13b1   :  { %2524 = vmatmul.mubr.msk.f32.vlgmr.msra.gmra.mrb[22].mxu1 %vm126_vm0, %v2035_v34 }
0x1480   :  { %v1998_v39 = vpop.f32.mrb[22].mxu0 }
0x1481   :  { %v2002_v32 = vadd.f32 %v1998_v39, %v3152_v61  ;;  %v2514_v13 = vpop.f32.mrb[23].mxu0 }
0x1483   :  { %2766 = vtanh.f32 %v2002_v32  ;;  %v2203_v15 = vmul.f32 -1.442695, %v2002_v32 }
0x1484   :  { %v2104_v12 = vpop.f32.mrb[22].mxu1 }
0x1485   :  { %v2108_v18 = vadd.f32 %v2104_v12, %v3134_v44  ;;  %v2525_v6 = vpop.f32.mrb[23].mxu1 }
0x1487   :  { %2768 = vtanh.f32 %v2108_v18  ;;  %v2205_v38 = vmul.f32 -1.442695, %v2108_v18 }
0x1488   :  { %2770 = vpow2.f32 %v2203_v15 }
0x1489   :  { %2772 = vpow2.f32 %v2205_v38 }
0x148d   :  { %v2767_v14 = vpop.eup %2766 }
0x148e   :  { %2012 = vrot.lane.b32.xlu1 %v2767_v14, %s2933_s24 }
0x1491   :  { %v2769_v9 = vpop.eup %2768 }
0x1492   :  { %2118 = vrot.lane.b32.xlu0 %v2769_v9, %s2933_s24  ;;  %v2771_v47 = vpop.eup %2770 }
0x1493   :  { %v2006_v27 = vadd.f32 1.0, %v2771_v47  ;;  %v2773_v61 = vpop.eup %2772 }
0x1494   :  { %v2112_v23 = vadd.f32 1.0, %v2773_v61 }
0x1495   :  { %2774 = vrcp.f32 %v2006_v27 }
0x1496   :  { %2776 = vrcp.f32 %v2112_v23 }
0x149f   :  { %v2775_v19 = vpop.eup %2774 }
0x14a0   :  { %v2777_v29 = vpop.eup %2776  ;;  %v2010_v45 = vmul.f32 %v2775_v19, %v1812_v17 }
0x14a1   :  { %v2116_v55 = vmul.f32 %v2777_v29, %v1920_v5 }
0x1500   :  { %v2013_v44 = vpop.permute.xlu1 %2012 }
0x1501   :  { %v2015_v33 = vmul.f32 %v2775_v19, %v2013_v44 }
0x1503   :  { %2017 = vrot.lane.b32.xlu1 %v2015_v33, %s2934_s1 }
0x1504   :  { %v2119_v16 = vpop.permute.xlu0 %2118 }
0x1505   :  { %v2121_v63 = vmul.f32 %v2777_v29, %v2119_v16 }
0x1507   :  { %2123 = vrot.lane.b32.xlu0 %v2121_v63, %s2934_s1 }
0x1575   :  { %v2018_v41 = vpop.permute.xlu1 %2017 }
0x1576   :  { %v2020_v57 = vadd.f32 %v2018_v41, %v2010_v45 }
0x1578   :  { %2778 = vtanh.f32 %v2020_v57 }
0x1579   :  { %v2124_v53 = vpop.permute.xlu0 %2123 }
0x157a   :  { %v2126_v20 = vadd.f32 %v2124_v53, %v2116_v55 }
0x157c   :  { %2780 = vtanh.f32 %v2126_v20 }
0x1582   :  { %v2779_v52 = vpop.eup %2778 }
0x1583   :  { %2023 = vrot.lane.b32.xlu1 %v2779_v52, %s2933_s24 }
0x1586   :  { %v2781_v22 = vpop.eup %2780 }
0x1587   :  { %2129 = vrot.lane.b32.xlu0 %v2781_v22, %s2933_s24  ;;  %593 = vrot.lane.b32.xlu1 %v3193_v62, %s2933_s24  ;;  %v1044_v62 = vsel %vm1041_vm13, %v3329_v4, 0.0  ;;  %v1489_v4 = vsel %vm1155_vm2, %v3464_v56, 0.0 }
0x158b   :  { %705 = vrot.lane.b32.xlu0 %v703_v60, %s2934_s1  ;;  %818 = vrot.lane.b32.xlu1 %v816_v49, %s2933_s24 }
0x158f   :  { %932 = vrot.lane.b32.xlu0 %v930_v21, %s2934_s1  ;;  %1046 = vrot.lane.b32.xlu1 %v1044_v62, %s2933_s24 }
0x1593   :  { %1160 = vrot.lane.b32.xlu0 %v1158_v54, %s2934_s1  ;;  %1274 = vrot.lane.b32.xlu1 %v1272_v0, %s2933_s24 }
0x1597   :  { %1383 = vrot.lane.b32.xlu0 %v1381_v40, %s2934_s1  ;;  %1491 = vrot.lane.b32.xlu1 %v1489_v4, %s2933_s24 }
0x159b   :  { %1599 = vrot.lane.b32.xlu0 %v1597_v42, %s2934_s1  ;;  %1707 = vrot.lane.b32.xlu1 %v1705_v8, %s2933_s24 }
0x159f   :  { %1815 = vrot.lane.b32.xlu0 %v1813_v3, %s2934_s1  ;;  %1923 = vrot.lane.b32.xlu1 %v1921_v7, %s2933_s24 }
0x15f5   :  { %v2024_v2 = vpop.permute.xlu1 %2023 }
0x15f6   :  { %v2026_v10 = vmul.f32 %v2775_v19, %v2024_v2 }
0x15f8   :  { %v2027_v59 = vsel %vm589_vm5, %v2026_v10, 0.0 }
0x15f9   :  { %v2130_v56 = vpop.permute.xlu0 %2129  ;;  %2029 = vrot.lane.b32.xlu0 %v2027_v59, %s2934_s1  ;;  %v594_v11 = vpop.permute.xlu1 %593 }
0x15fa   :  { %v2132_v51 = vmul.f32 %v2777_v29, %v2130_v56  ;;  %598 = vst.msk [vmem:[#allocation11 + $0x38] sm:$0xff] %vm597_vm1, %v594_v11 }
0x15fc   :  { %v2133_v46 = vsel %vm482_vm4, %v2132_v51, 0.0 }
0x15fd   :  { %v706_v58 = vpop.permute.xlu0 %705  ;;  %2135 = vrot.lane.b32.xlu1 %v2133_v46, %s2933_s24  ;;  %v819_v24 = vpop.permute.xlu1 %818 }
0x15fe   :  { %709 = vst.msk [vmem:[#allocation11 + $0x8] sm:$0xff] %vm126_vm0, %v706_v58 }
0x15ff   :  { %822 = vst.msk [vmem:[#allocation11 + $0x30] sm:$0xff] %vm597_vm1, %v819_v24 }
0x1601   :  { %v933_v48 = vpop.permute.xlu0 %932  ;;  %v1047_v37 = vpop.permute.xlu1 %1046 }
0x1602   :  { %936 = vst.msk [vmem:[#allocation11 + $0x10] sm:$0xff] %vm126_vm0, %v933_v48 }
0x1603   :  { %1050 = vst.msk [vmem:[#allocation11 + $0x28] sm:$0xff] %vm597_vm1, %v1047_v37 }
0x1605   :  { %v1161_v43 = vpop.permute.xlu0 %1160  ;;  %v1275_v31 = vpop.permute.xlu1 %1274 }
0x1606   :  { %1164 = vst.msk [vmem:[#allocation11 + $0x18] sm:$0xff] %vm126_vm0, %v1161_v43 }
0x1607   :  { %1278 = vst.msk [vmem:[#allocation11 + $0x20] sm:$0xff] %vm597_vm1, %v1275_v31 }
0x1609   :  { %v1384_v50 = vpop.permute.xlu0 %1383  ;;  %v1492_v28 = vpop.permute.xlu1 %1491 }
0x160a   :  { %1386 = vst.msk [vmem:[#allocation11 + $0x20] sm:$0xff] %vm126_vm0, %v1384_v50 }
0x160b   :  { %1494 = vst.msk [vmem:[#allocation11 + $0x18] sm:$0xff] %vm597_vm1, %v1492_v28 }
0x160d   :  { %v1600_v25 = vpop.permute.xlu0 %1599  ;;  %v1708_v26 = vpop.permute.xlu1 %1707 }
0x160e   :  { %1602 = vst.msk [vmem:[#allocation11 + $0x28] sm:$0xff] %vm126_vm0, %v1600_v25 }
0x160f   :  { %1710 = vst.msk [vmem:[#allocation11 + $0x10] sm:$0xff] %vm597_vm1, %v1708_v26 }
0x1611   :  { %v1816_v36 = vpop.permute.xlu0 %1815  ;;  %v1924_v1 = vpop.permute.xlu1 %1923 }
0x1612   :  { %1818 = vst.msk [vmem:[#allocation11 + $0x30] sm:$0xff] %vm126_vm0, %v1816_v36 }
0x1613   :  { %1926 = vst.msk [vmem:[#allocation11 + $0x8] sm:$0xff] %vm597_vm1, %v1924_v1 }
0x166b   :  { %v2030_v35 = vpop.permute.xlu0 %2029 }
0x166c   :  { %2032 = vst.msk [vmem:[#allocation11 + $0x38] sm:$0xff] %vm126_vm0, %v2030_v35 }
0x166f   :  { %v2136_v30 = vpop.permute.xlu1 %2135 }
0x1670   :  { %2138 = vst.msk [vmem:[#allocation11] sm:$0xff] %vm597_vm1, %v2136_v30 }
0x1671   :  { %2903 = shalt.err (!%p2900_p2)
}
0x1672   :  { %s2904_s28 = scalar_lea.hbm %s3678_s8, 1024 }
0x1673   :  { %p2905_p3 = scmp.ne.s32.totalorder %s3678_s8, %s2904_s28  ;;  %p2908_p4 = scmp.lt.u32.totalorder %s2904_s28, %s3678_s8 }
0x1675   :  { %p2910_p5 = pnand %p2908_p4, %p2905_p3 }
0x1677   :  { %2913 = shalt.err (!%p2910_p5)
}
0x1678   :  { %2150 = dma.vmem_to_hbm [thread:$0]  %s2145_s26, 1024, %s3678_s8, [#allocation4], %s2924_s17, %s2924_s17, %s2925_s18  }
0x1679   :  { %2920 = dma.done.wait [#allocation4], 1024  }
0x167a   :  { %2921 = vsyncadd [#allocation4], 4294966272 }
0x167b   :  { %2154 = vsyncpa [#allocation3], 1 }
0x167c   :  { %2155 = vsyncpa [#allocation6], 1 }
0x167d   :  { %2156 = vsyncpa [#allocation9], 1 }
0x167e   :  { %2157 = vsyncpa [#allocation4], 1 }

</bundles_post_ra>
